<compile_context>
chip_gen: v6e
topology: v6e:2x2x1
jax: 0.10.0
libtpu: 0.0.40
codegen_flags: <defaults>
</compile_context>

<pallas_src>
import functools

import jax
import jax.numpy as jnp
from jax.experimental import pallas as pl
from jax.experimental.pallas import tpu as pltpu

# ----------------------------- small config -----------------------------------
B = 2          # batch                    (any in reference)
S = 16         # sequence length          (<= max_seq_length=128 in reference)
H = 128        # hidden size              (768 in bert-base-uncased) -- lane-dense
NH = 4         # attention heads          (12 in bert-base-uncased)
DH = H // NH
FF = 512       # intermediate size        (3072 in bert-base-uncased)
L = 2          # encoder layers           (12 in bert-base-uncased)
VOCAB = 64     # vocab size               (30522 in bert-base-uncased)
MAX_POS = 128
LN_EPS = 1e-12
DTYPE = jnp.float32        # params / LN stats / softmax / final sentence embedding
ACT_DTYPE = jnp.bfloat16   # intermediate activations stored in HBM
W_DTYPE = jnp.bfloat16     # matmul weight storage (MXU bf16 path)


def _pick_tile(dim, cap=512):
    """Largest hardware-friendly tile (multiple of 128, <= cap) dividing dim."""
    for t in (512, 384, 256, 128):
        if t <= cap and t <= dim and dim % t == 0:
            return t
    return dim


def _pick_row_tile(m, cap=512):
    """Largest sublane-friendly row tile (multiple of 8, <= cap) dividing m."""
    for t in (512, 256, 128, 64, 32, 16, 8):
        if t <= cap and t <= m and m % t == 0:
            return t
    return m


def _vmem_limit_bytes(tm, tk, tn, nk, fuse_ln, x_bytes, w_bytes, out_bytes):
    """Scoped-VMEM request derived from the chosen tiles (not hardcoded)."""
    need = 2 * (tm * tk * x_bytes + tk * tn * w_bytes)   # double-buffered matmul inputs
    need += 2 * tm * tn * out_bytes                      # double-buffered output
    need += 2 * tn * 4                                   # bias
    if nk > 1:
        need += tm * tn * 4                              # f32 accumulator scratch
    if fuse_ln:
        need += 2 * tm * tn * x_bytes + 4 * tn * 4       # residual + gamma/beta
    # 4x headroom for compiler temporaries; floor at the common scoped default,
    # cap below v7x's 64 MiB-per-TensorCore physical VMEM.
    return int(min(48 * 1024 * 1024, max(4 * need, 32 * 1024 * 1024)))


# ----------------------------- dense (+bias +gelu +residual+LN) ----------------
def _epilogue(y, b_ref, rest, activation, fuse_ln, o_ref):
    """bias [+gelu] [+residual, LayerNorm] in f32; store in o_ref dtype."""
    y = y + b_ref[...].astype(jnp.float32)
    if activation == "gelu":
        # TODO(synk): HF BERT uses exact erf-GELU; tanh approximation (EUP path) here.
        y = jax.nn.gelu(y, approximate=True)
    if fuse_ln:
        res_ref, g_ref, beta_ref = rest
        y = y + res_ref[...].astype(jnp.float32)
        mean = jnp.mean(y, axis=-1, keepdims=True)
        var = jnp.mean((y - mean) ** 2, axis=-1, keepdims=True)
        y = (y - mean) * jax.lax.rsqrt(var + LN_EPS)
        y = y * g_ref[...].astype(jnp.float32) + beta_ref[...].astype(jnp.float32)
    o_ref[...] = y.astype(o_ref.dtype)


def _dense_kernel_1k(x_ref, w_ref, b_ref, *rest, activation, fuse_ln):
    """Single-K-step dense: no accumulator scratch, no pl.when phases."""
    if fuse_ln:
        res_ref, g_ref, beta_ref, o_ref = rest
        extra = (res_ref, g_ref, beta_ref)
    else:
        (o_ref,) = rest
        extra = ()
    y = jnp.dot(x_ref[...].astype(jnp.bfloat16),
                w_ref[...].astype(jnp.bfloat16),
                preferred_element_type=jnp.float32)
    _epilogue(y, b_ref, extra, activation, fuse_ln, o_ref)


def _dense_kernel_acc(x_ref, w_ref, b_ref, *rest, activation, fuse_ln):
    """Multi-K-step dense: acc += x @ w; on last K step run the epilogue."""
    if fuse_ln:
        res_ref, g_ref, beta_ref, o_ref, acc_ref = rest
        extra = (res_ref, g_ref, beta_ref)
    else:
        o_ref, acc_ref = rest
        extra = ()

    k = pl.program_id(2)

    @pl.when(k == 0)
    def _():
        acc_ref[...] = jnp.zeros_like(acc_ref)

    acc_ref[...] += jnp.dot(
        x_ref[...].astype(jnp.bfloat16),
        w_ref[...].astype(jnp.bfloat16),
        preferred_element_type=jnp.float32)

    @pl.when(k == pl.num_programs(2) - 1)
    def _():
        _epilogue(acc_ref[...], b_ref, extra, activation, fuse_ln, o_ref)


def dense_fused(x, w, b, *, activation=None,
                residual=None, ln_gamma=None, ln_beta=None, out_dtype=None):
    """o = [LN(res + )] act(x @ w + b).  x:[M,K] w:[K,N] b:[1,N]."""
    out_dtype = out_dtype or ACT_DTYPE
    M, K = x.shape
    Kw, N = w.shape
    assert K == Kw
    fuse_ln = ln_gamma is not None

    tm = _pick_tile(M)
    tk = _pick_tile(K)
    tn = N if fuse_ln else _pick_tile(N)   # LayerNorm needs the full row
    assert M % tm == 0 and N % tn == 0 and K % tk == 0
    nk = K // tk

    vmem = _vmem_limit_bytes(tm, tk, tn, nk, fuse_ln,
                             jnp.dtype(x.dtype).itemsize,
                             jnp.dtype(w.dtype).itemsize,
                             jnp.dtype(out_dtype).itemsize)

    if nk == 1:
        grid = (M // tm, N // tn)
        in_specs = [
            pl.BlockSpec((tm, tk), lambda i, j: (i, 0)),
            pl.BlockSpec((tk, tn), lambda i, j: (0, j)),
            pl.BlockSpec((1, tn), lambda i, j: (0, j)),
        ]
        args = [x, w, b]
        if fuse_ln:
            in_specs += [
                pl.BlockSpec((tm, tn), lambda i, j: (i, j)),   # residual
                pl.BlockSpec((1, tn), lambda i, j: (0, j)),    # gamma
                pl.BlockSpec((1, tn), lambda i, j: (0, j)),    # beta
            ]
            args += [residual, ln_gamma, ln_beta]
        kernel = functools.partial(_dense_kernel_1k,
                                   activation=activation, fuse_ln=fuse_ln)
        out_spec = pl.BlockSpec((tm, tn), lambda i, j: (i, j))
        scratch = []
        sem = ("parallel", "parallel")
    else:
        grid = (M // tm, N // tn, nk)
        in_specs = [
            pl.BlockSpec((tm, tk), lambda i, j, k: (i, k)),
            pl.BlockSpec((tk, tn), lambda i, j, k: (k, j)),
            pl.BlockSpec((1, tn), lambda i, j, k: (0, j)),
        ]
        args = [x, w, b]
        if fuse_ln:
            in_specs += [
                pl.BlockSpec((tm, tn), lambda i, j, k: (i, j)),   # residual
                pl.BlockSpec((1, tn), lambda i, j, k: (0, j)),    # gamma
                pl.BlockSpec((1, tn), lambda i, j, k: (0, j)),    # beta
            ]
            args += [residual, ln_gamma, ln_beta]
        kernel = functools.partial(_dense_kernel_acc,
                                   activation=activation, fuse_ln=fuse_ln)
        out_spec = pl.BlockSpec((tm, tn), lambda i, j, k: (i, j))
        scratch = [pltpu.VMEM((tm, tn), jnp.float32)]
        sem = ("parallel", "parallel", "arbitrary")

    return pl.pallas_call(
        kernel,
        out_shape=jax.ShapeDtypeStruct((M, N), out_dtype),
        grid=grid,
        in_specs=in_specs,
        out_specs=out_spec,
        scratch_shapes=scratch,
        compiler_params=pltpu.CompilerParams(
            dimension_semantics=sem,
            vmem_limit_bytes=vmem),
    )(*args)


# ----------------------------- embedding add + LayerNorm -----------------------
def _add_ln_kernel(x_ref, r_ref, g_ref, b_ref, o_ref):
    """o = LayerNorm(x + r) over last dim; x,r:[tm,H] g,b:[1,H]."""
    x = x_ref[...].astype(jnp.float32) + r_ref[...].astype(jnp.float32)
    mean = jnp.mean(x, axis=-1, keepdims=True)
    var = jnp.mean((x - mean) ** 2, axis=-1, keepdims=True)
    y = (x - mean) * jax.lax.rsqrt(var + LN_EPS)
    o_ref[...] = (y * g_ref[...].astype(jnp.float32)
                  + b_ref[...].astype(jnp.float32)).astype(o_ref.dtype)


def add_layernorm(x, res, gamma, beta):
    M, Hd = x.shape
    tm = _pick_row_tile(M)
    return pl.pallas_call(
        _add_ln_kernel,
        out_shape=jax.ShapeDtypeStruct((M, Hd), ACT_DTYPE),
        grid=(M // tm,),
        in_specs=[
            pl.BlockSpec((tm, Hd), lambda i: (i, 0)),
            pl.BlockSpec((tm, Hd), lambda i: (i, 0)),
            pl.BlockSpec((1, Hd), lambda i: (0, 0)),
            pl.BlockSpec((1, Hd), lambda i: (0, 0)),
        ],
        out_specs=pl.BlockSpec((tm, Hd), lambda i: (i, 0)),
        compiler_params=pltpu.CompilerParams(
            dimension_semantics=("parallel",)),
    )(x, res, gamma, beta)


# ----------------------------- attention ---------------------------------------
def _attention_kernel(q_ref, k_ref, v_ref, mask_ref, o_ref):
    """All-heads scaled-dot-product attention for one batch element.

    q/k/v blocks: [S, H] column slabs of the fused [B*S, 3H] QKV buffer.
    mask block: [1, 1, S] (1=keep, 0=pad).  Output block: merged-head [S, H]
    (lane width 128 -> unmasked stores).  Softmax / scores in f32, MXU in bf16.
    """
    m = mask_ref[0].astype(jnp.float32)            # [1, S]
    bias = (1.0 - m) * (-1e9)                      # computed once per batch (not per head)
    scale = 1.0 / (DH ** 0.5)

    q = q_ref[...]                                 # [S, H] bf16
    k = k_ref[...]
    v = v_ref[...]

    ctxs = []
    for h in range(NH):                            # static per-head slices of the lane dim
        sl = slice(h * DH, (h + 1) * DH)
        qh = q[:, sl].astype(jnp.bfloat16)
        kh = k[:, sl].astype(jnp.bfloat16)
        vh = v[:, sl].astype(jnp.bfloat16)
        s = jax.lax.dot_general(
            qh, kh, (((1,), (1,)), ((), ())),      # contract DH, no explicit transpose
            preferred_element_type=jnp.float32) * scale + bias
        s_max = jnp.max(s, axis=-1, keepdims=True)
        p = jnp.exp(s - s_max)
        p = p * pl.reciprocal(jnp.sum(p, axis=-1, keepdims=True), approx=True)
        ctxs.append(jnp.dot(p.astype(jnp.bfloat16), vh,
                            preferred_element_type=jnp.float32))
    o_ref[...] = jnp.concatenate(ctxs, axis=-1).astype(o_ref.dtype)   # [S, H] lane-dense


def attention(qkv2, mask_b1s):
    """qkv2: [B*S, 3H] (q|k|v columns); mask: [B, 1, S] -> ctx: [B*S, H]."""
    return pl.pallas_call(
        _attention_kernel,
        out_shape=jax.ShapeDtypeStruct((B * S, H), ACT_DTYPE),
        grid=(B,),
        in_specs=[
            pl.BlockSpec((S, H), lambda b: (b, 0)),     # q columns
            pl.BlockSpec((S, H), lambda b: (b, 1)),     # k columns
            pl.BlockSpec((S, H), lambda b: (b, 2)),     # v columns
            pl.BlockSpec((1, 1, S), lambda b: (b, 0, 0)),
        ],
        out_specs=pl.BlockSpec((S, H), lambda b: (b, 0)),
        compiler_params=pltpu.CompilerParams(
            dimension_semantics=("parallel",)),
    )(qkv2, qkv2, qkv2, mask_b1s)


# ----------------------------- masked mean pooling ------------------------------
def _mean_pool_kernel(x_ref, mask_ref, o_ref):
    """Masked mean over the sequence axis. x:[B,S,H] mask:[B,S,1] o:[B,H]."""
    x = x_ref[...].astype(jnp.float32)
    m = mask_ref[...].astype(jnp.float32)
    summed = jnp.sum(x * m, axis=1)                   # [B, H]
    denom = jnp.maximum(jnp.sum(m, axis=1), 1e-9)     # [B, 1] (clamp like sentence-transformers)
    o_ref[...] = (summed / denom).astype(o_ref.dtype)


def mean_pool(x, mask_bs1):
    return pl.pallas_call(
        _mean_pool_kernel,
        out_shape=jax.ShapeDtypeStruct((B, H), DTYPE),
        grid=(1,),
        in_specs=[
            pl.BlockSpec((B, S, H), lambda i: (0, 0, 0)),
            pl.BlockSpec((B, S, 1), lambda i: (0, 0, 0)),
        ],
        out_specs=pl.BlockSpec((B, H), lambda i: (0, 0)),
    )(x, mask_bs1)


# ----------------------------- model glue --------------------------------------
def init_params(key):
    def nrm(k, shape, dtype):
        return (jax.random.normal(k, shape, jnp.float32) * 0.02).astype(dtype)

    keys = iter(jax.random.split(key, 8 + 8 * L))
    params = {
        "word_emb": nrm(next(keys), (VOCAB, H), DTYPE),
        "pos_emb": nrm(next(keys), (MAX_POS, H), DTYPE),
        "type_emb": nrm(next(keys), (2, H), DTYPE),
        "emb_ln_g": jnp.ones((1, H), DTYPE),
        "emb_ln_b": jnp.zeros((1, H), DTYPE),
        "layers": [],
    }
    for _ in range(L):
        wq = nrm(next(keys), (H, H), W_DTYPE)
        wk = nrm(next(keys), (H, H), W_DTYPE)
        wv = nrm(next(keys), (H, H), W_DTYPE)
        lp = {
            # fused Q|K|V projection: one [H, 3H] weight, one [1, 3H] bias
            "wqkv": jnp.concatenate([wq, wk, wv], axis=1),
            "bqkv": jnp.zeros((1, 3 * H), DTYPE),
            "wo": nrm(next(keys), (H, H), W_DTYPE), "bo": jnp.zeros((1, H), DTYPE),
            "ln1_g": jnp.ones((1, H), DTYPE), "ln1_b": jnp.zeros((1, H), DTYPE),
            "w1": nrm(next(keys), (H, FF), W_DTYPE), "b1": jnp.zeros((1, FF), DTYPE),
            "w2": nrm(next(keys), (FF, H), W_DTYPE), "b2": jnp.zeros((1, H), DTYPE),
            "ln2_g": jnp.ones((1, H), DTYPE), "ln2_b": jnp.zeros((1, H), DTYPE),
        }
        params["layers"].append(lp)
    return params


def embeddings(params, input_ids):
    we = jnp.take(params["word_emb"], input_ids, axis=0)          # [B, S, H]
    pos = params["pos_emb"][:S][None, :, :]                       # [1, S, H]
    tok = params["type_emb"][0][None, None, :]                    # [1, 1, H] (token_type_ids = 0)
    other = jnp.broadcast_to(pos + tok, we.shape)
    x = add_layernorm(we.reshape(B * S, H), other.reshape(B * S, H),
                      params["emb_ln_g"], params["emb_ln_b"])
    return x                                                       # [B*S, H] bf16


def bert_layer(x2, mask_b1s, lp):
    """x2: [B*S, H] -> [B*S, H]."""
    # fused QKV projection (single tiled matmul, lane-dense 3H output)
    qkv = dense_fused(x2, lp["wqkv"], lp["bqkv"])                  # [B*S, 3H] bf16

    # attention reads q/k/v straight out of the qkv buffer (no XLA transposes)
    ctx2 = attention(qkv, mask_b1s)                                # [B*S, H] bf16

    # attention output projection with fused residual-add + LayerNorm epilogue
    h1 = dense_fused(ctx2, lp["wo"], lp["bo"],
                     residual=x2, ln_gamma=lp["ln1_g"], ln_beta=lp["ln1_b"])
    # FFN: up-projection + GELU, then down-projection fused with residual + LN
    ff = dense_fused(h1, lp["w1"], lp["b1"], activation="gelu")
    h2 = dense_fused(ff, lp["w2"], lp["b2"],
                     residual=h1, ln_gamma=lp["ln2_g"], ln_beta=lp["ln2_b"])
    return h2


def bert_for_sts(params, input_ids, attention_mask):
    """Forward of BertForSTS: BERT encoder -> masked mean pooling -> sentence embedding [B, H]."""
    mask_b1s = attention_mask.astype(DTYPE).reshape(B, 1, S)      # key mask for attention
    mask_bs1 = attention_mask.astype(DTYPE).reshape(B, S, 1)      # token mask for pooling
    x2 = embeddings(params, input_ids)                            # [B*S, H]
    for lp in params["layers"]:
        x2 = bert_layer(x2, mask_b1s, lp)
    sentence_embedding = mean_pool(x2.reshape(B, S, H), mask_bs1)  # [B, H] f32
    return sentence_embedding


# ----------------------------- main ---------------------------------------------
if __name__ == "__main__":
    key = jax.random.PRNGKey(0)
    pkey, dkey = jax.random.split(key)
    params = init_params(pkey)

    input_ids = jax.random.randint(dkey, (B, S), 0, VOCAB, dtype=jnp.int32)
    attention_mask = jnp.array(
        [[1] * S,
         [1] * (S - 5) + [0] * 5],
        dtype=jnp.int32)

    fwd = jax.jit(bert_for_sts)
    out = fwd(params, input_ids, attention_mask)
    out = jax.block_until_ready(out)

    assert out.shape == (B, H), out.shape
    assert out.dtype == DTYPE
    assert bool(jnp.all(jnp.isfinite(out)))
    print("KERNEL_OK")
</pallas_src>

<mosaic_0001>
module attributes {stable_mosaic.version = 11 : i64} {
  func.func @_dense_kernel_1k(%arg0: i32, %arg1: i32, %arg2: memref<32x128xbf16, #tpu.memory_space<vmem>>, %arg3: memref<128x384xbf16, #tpu.memory_space<vmem>>, %arg4: memref<1x384xf32, #tpu.memory_space<vmem>>, %arg5: memref<32x384xbf16, #tpu.memory_space<vmem>>) attributes {dimension_semantics = [#tpu.dimension_semantics<parallel>, #tpu.dimension_semantics<parallel>], iteration_bounds = array<i64: 1, 1>, scalar_prefetch = 0 : i64, scratch_operands = 0 : i64, tpu.core_type = #tpu.core_type<tc>, window_params = [{transform_indices = @transform_0, window_bounds = array<i64: 32, 128>}, {transform_indices = @transform_1, window_bounds = array<i64: 128, 384>}, {transform_indices = @transform_2, window_bounds = array<i64: 1, 384>}, {transform_indices = @transform_3, window_bounds = array<i64: 32, 384>}]} {
    %c0 = arith.constant 0 : index
    %c0_0 = arith.constant 0 : index
    %0 = vector.load %arg2[%c0, %c0_0] : memref<32x128xbf16, #tpu.memory_space<vmem>>, vector<32x128xbf16>
    %c0_1 = arith.constant 0 : index
    %c0_2 = arith.constant 0 : index
    %1 = vector.load %arg3[%c0_1, %c0_2] : memref<128x384xbf16, #tpu.memory_space<vmem>>, vector<128x384xbf16>
    %cst = arith.constant dense<0.000000e+00> : vector<32x384xf32>
    %2 = tpu.matmul %0, %1, %cst {dimension_numbers = #tpu.dot_dimension_numbers<[1], [0], [0], [1], [0, 0, 1, 1], [], []>} : vector<32x128xbf16>, vector<128x384xbf16>, vector<32x384xf32> -> vector<32x384xf32>
    %c0_3 = arith.constant 0 : index
    %c0_4 = arith.constant 0 : index
    %3 = vector.load %arg4[%c0_3, %c0_4] : memref<1x384xf32, #tpu.memory_space<vmem>>, vector<1x384xf32>
    %4 = vector.broadcast %3 : vector<1x384xf32> to vector<32x384xf32>
    %5 = arith.addf %2, %4 : vector<32x384xf32>
    %6 = arith.truncf %5 : vector<32x384xf32> to vector<32x384xbf16>
    %c0_5 = arith.constant 0 : index
    %c0_6 = arith.constant 0 : index
    %7 = vector.load %arg5[%c0_5, %c0_6] : memref<32x384xbf16, #tpu.memory_space<vmem>>, vector<32x384xbf16>
    tpu.vector_store %arg5[%c0_5, %c0_6], %6 {strides = array<i32>} : memref<32x384xbf16, #tpu.memory_space<vmem>>, vector<32x384xbf16>,
    return
  }
  func.func @transform_0(%arg0: i32, %arg1: i32) -> (i32, i32) {
    %c0_i32 = arith.constant 0 : i32
    %c0_i32_0 = arith.constant 0 : i32
    return %arg0, %c0_i32 : i32, i32
  }
  func.func @transform_1(%arg0: i32, %arg1: i32) -> (i32, i32) {
    %c0_i32 = arith.constant 0 : i32
    %c0_i32_0 = arith.constant 0 : i32
    return %c0_i32, %arg1 : i32, i32
  }
  func.func @transform_2(%arg0: i32, %arg1: i32) -> (i32, i32) {
    %c0_i32 = arith.constant 0 : i32
    %c0_i32_0 = arith.constant 0 : i32
    return %c0_i32, %arg1 : i32, i32
  }
  func.func @transform_3(%arg0: i32, %arg1: i32) -> (i32, i32) {
    %c0_i32 = arith.constant 0 : i32
    return %arg0, %arg1 : i32, i32
  }
}

module attributes {stable_mosaic.version = 11 : i64} {
  func.func @_add_ln_kernel(%arg0: i32, %arg1: memref<32x128xf32, #tpu.memory_space<vmem>>, %arg2: memref<32x128xf32, #tpu.memory_space<vmem>>, %arg3: memref<1x128xf32, #tpu.memory_space<vmem>>, %arg4: memref<1x128xf32, #tpu.memory_space<vmem>>, %arg5: memref<32x128xbf16, #tpu.memory_space<vmem>>) attributes {dimension_semantics = [#tpu.dimension_semantics<parallel>], iteration_bounds = array<i64: 1>, scalar_prefetch = 0 : i64, scratch_operands = 0 : i64, tpu.core_type = #tpu.core_type<tc>, window_params = [{transform_indices = @transform_0, window_bounds = array<i64: 32, 128>}, {transform_indices = @transform_1, window_bounds = array<i64: 32, 128>}, {pipeline_mode = #tpu.pipeline_mode<synchronous>, transform_indices = @transform_2, window_bounds = array<i64: 1, 128>}, {pipeline_mode = #tpu.pipeline_mode<synchronous>, transform_indices = @transform_3, window_bounds = array<i64: 1, 128>}, {transform_indices = @transform_4, window_bounds = array<i64: 32, 128>}]} {
    %c0 = arith.constant 0 : index
    %c0_0 = arith.constant 0 : index
    %0 = vector.load %arg1[%c0, %c0_0] : memref<32x128xf32, #tpu.memory_space<vmem>>, vector<32x128xf32>
    %c0_1 = arith.constant 0 : index
    %c0_2 = arith.constant 0 : index
    %1 = vector.load %arg2[%c0_1, %c0_2] : memref<32x128xf32, #tpu.memory_space<vmem>>, vector<32x128xf32>
    %2 = arith.addf %0, %1 : vector<32x128xf32>
    %cst = arith.constant dense<0.000000e+00> : vector<32xf32>
    %3 = vector.multi_reduction <add>, %2, %cst [1] : vector<32x128xf32> to vector<32xf32>
    %4 = vector.shape_cast %3 : vector<32xf32> to vector<32x1xf32>
    %cst_3 = arith.constant 1.280000e+02 : f32
    %5 = vector.broadcast %cst_3 : f32 to vector<32x1xf32>
    %6 = arith.divf %4, %5 : vector<32x1xf32>
    %7 = vector.broadcast %6 : vector<32x1xf32> to vector<32x128xf32>
    %8 = arith.subf %2, %7 : vector<32x128xf32>
    %9 = arith.mulf %8, %8 : vector<32x128xf32>
    %cst_4 = arith.constant dense<0.000000e+00> : vector<32xf32>
    %10 = vector.multi_reduction <add>, %9, %cst_4 [1] : vector<32x128xf32> to vector<32xf32>
    %11 = vector.shape_cast %10 : vector<32xf32> to vector<32x1xf32>
    %cst_5 = arith.constant 1.280000e+02 : f32
    %12 = vector.broadcast %cst_5 : f32 to vector<32x1xf32>
    %13 = arith.divf %11, %12 : vector<32x1xf32>
    %14 = vector.broadcast %6 : vector<32x1xf32> to vector<32x128xf32>
    %15 = arith.subf %2, %14 : vector<32x128xf32>
    %cst_6 = arith.constant 9.99999996E-13 : f32
    %16 = vector.broadcast %cst_6 : f32 to vector<32x1xf32>
    %17 = arith.addf %13, %16 : vector<32x1xf32>
    %18 = math.rsqrt %17 : vector<32x1xf32>
    %19 = vector.broadcast %18 : vector<32x1xf32> to vector<32x128xf32>
    %20 = arith.mulf %15, %19 : vector<32x128xf32>
    %c0_7 = arith.constant 0 : index
    %c0_8 = arith.constant 0 : index
    %21 = vector.load %arg3[%c0_7, %c0_8] : memref<1x128xf32, #tpu.memory_space<vmem>>, vector<1x128xf32>
    %22 = vector.broadcast %21 : vector<1x128xf32> to vector<32x128xf32>
    %23 = arith.mulf %20, %22 : vector<32x128xf32>
    %c0_9 = arith.constant 0 : index
    %c0_10 = arith.constant 0 : index
    %24 = vector.load %arg4[%c0_9, %c0_10] : memref<1x128xf32, #tpu.memory_space<vmem>>, vector<1x128xf32>
    %25 = vector.broadcast %24 : vector<1x128xf32> to vector<32x128xf32>
    %26 = arith.addf %23, %25 : vector<32x128xf32>
    %27 = arith.truncf %26 : vector<32x128xf32> to vector<32x128xbf16>
    %c0_11 = arith.constant 0 : index
    %c0_12 = arith.constant 0 : index
    %28 = vector.load %arg5[%c0_11, %c0_12] : memref<32x128xbf16, #tpu.memory_space<vmem>>, vector<32x128xbf16>
    tpu.vector_store %arg5[%c0_11, %c0_12], %27 {strides = array<i32>} : memref<32x128xbf16, #tpu.memory_space<vmem>>, vector<32x128xbf16>,
    return
  }
  func.func @transform_0(%arg0: i32) -> (i32, i32) {
    %c0_i32 = arith.constant 0 : i32
    %c0_i32_0 = arith.constant 0 : i32
    return %arg0, %c0_i32 : i32, i32
  }
  func.func @transform_1(%arg0: i32) -> (i32, i32) {
    %c0_i32 = arith.constant 0 : i32
    %c0_i32_0 = arith.constant 0 : i32
    return %arg0, %c0_i32 : i32, i32
  }
  func.func @transform_2(%arg0: i32) -> (i32, i32) {
    %c0_i32 = arith.constant 0 : i32
    %c0_i32_0 = arith.constant 0 : i32
    %c0_i32_1 = arith.constant 0 : i32
    return %c0_i32, %c0_i32_0 : i32, i32
  }
  func.func @transform_3(%arg0: i32) -> (i32, i32) {
    %c0_i32 = arith.constant 0 : i32
    %c0_i32_0 = arith.constant 0 : i32
    %c0_i32_1 = arith.constant 0 : i32
    return %c0_i32, %c0_i32_0 : i32, i32
  }
  func.func @transform_4(%arg0: i32) -> (i32, i32) {
    %c0_i32 = arith.constant 0 : i32
    %c0_i32_0 = arith.constant 0 : i32
    return %arg0, %c0_i32 : i32, i32
  }
}

module attributes {stable_mosaic.version = 11 : i64} {
  func.func @_dense_kernel_1k(%arg0: i32, %arg1: i32, %arg2: memref<32x128xbf16, #tpu.memory_space<vmem>>, %arg3: memref<128x128xbf16, #tpu.memory_space<vmem>>, %arg4: memref<1x128xf32, #tpu.memory_space<vmem>>, %arg5: memref<32x128xbf16, #tpu.memory_space<vmem>>, %arg6: memref<1x128xf32, #tpu.memory_space<vmem>>, %arg7: memref<1x128xf32, #tpu.memory_space<vmem>>, %arg8: memref<32x128xbf16, #tpu.memory_space<vmem>>) attributes {dimension_semantics = [#tpu.dimension_semantics<parallel>, #tpu.dimension_semantics<parallel>], iteration_bounds = array<i64: 1, 1>, scalar_prefetch = 0 : i64, scratch_operands = 0 : i64, tpu.core_type = #tpu.core_type<tc>, window_params = [{transform_indices = @transform_0, window_bounds = array<i64: 32, 128>}, {transform_indices = @transform_1, window_bounds = array<i64: 128, 128>}, {transform_indices = @transform_2, window_bounds = array<i64: 1, 128>}, {transform_indices = @transform_3, window_bounds = array<i64: 32, 128>}, {transform_indices = @transform_4, window_bounds = array<i64: 1, 128>}, {transform_indices = @transform_5, window_bounds = array<i64: 1, 128>}, {transform_indices = @transform_6, window_bounds = array<i64: 32, 128>}]} {
    %c0 = arith.constant 0 : index
    %c0_0 = arith.constant 0 : index
    %0 = vector.load %arg2[%c0, %c0_0] : memref<32x128xbf16, #tpu.memory_space<vmem>>, vector<32x128xbf16>
    %c0_1 = arith.constant 0 : index
    %c0_2 = arith.constant 0 : index
    %1 = vector.load %arg3[%c0_1, %c0_2] : memref<128x128xbf16, #tpu.memory_space<vmem>>, vector<128x128xbf16>
    %cst = arith.constant dense<0.000000e+00> : vector<32x128xf32>
    %2 = tpu.matmul %0, %1, %cst {dimension_numbers = #tpu.dot_dimension_numbers<[1], [0], [0], [1], [0, 0, 1, 1], [], []>} : vector<32x128xbf16>, vector<128x128xbf16>, vector<32x128xf32> -> vector<32x128xf32>
    %c0_3 = arith.constant 0 : index
    %c0_4 = arith.constant 0 : index
    %3 = vector.load %arg4[%c0_3, %c0_4] : memref<1x128xf32, #tpu.memory_space<vmem>>, vector<1x128xf32>
    %4 = vector.broadcast %3 : vector<1x128xf32> to vector<32x128xf32>
    %5 = arith.addf %2, %4 : vector<32x128xf32>
    %c0_5 = arith.constant 0 : index
    %c0_6 = arith.constant 0 : index
    %6 = vector.load %arg5[%c0_5, %c0_6] : memref<32x128xbf16, #tpu.memory_space<vmem>>, vector<32x128xbf16>
    %7 = arith.extf %6 : vector<32x128xbf16> to vector<32x128xf32>
    %8 = arith.addf %5, %7 : vector<32x128xf32>
    %cst_7 = arith.constant dense<0.000000e+00> : vector<32xf32>
    %9 = vector.multi_reduction <add>, %8, %cst_7 [1] : vector<32x128xf32> to vector<32xf32>
    %10 = vector.shape_cast %9 : vector<32xf32> to vector<32x1xf32>
    %cst_8 = arith.constant 1.280000e+02 : f32
    %11 = vector.broadcast %cst_8 : f32 to vector<32x1xf32>
    %12 = arith.divf %10, %11 : vector<32x1xf32>
    %13 = vector.broadcast %12 : vector<32x1xf32> to vector<32x128xf32>
    %14 = arith.subf %8, %13 : vector<32x128xf32>
    %15 = arith.mulf %14, %14 : vector<32x128xf32>
    %cst_9 = arith.constant dense<0.000000e+00> : vector<32xf32>
    %16 = vector.multi_reduction <add>, %15, %cst_9 [1] : vector<32x128xf32> to vector<32xf32>
    %17 = vector.shape_cast %16 : vector<32xf32> to vector<32x1xf32>
    %cst_10 = arith.constant 1.280000e+02 : f32
    %18 = vector.broadcast %cst_10 : f32 to vector<32x1xf32>
    %19 = arith.divf %17, %18 : vector<32x1xf32>
    %20 = vector.broadcast %12 : vector<32x1xf32> to vector<32x128xf32>
    %21 = arith.subf %8, %20 : vector<32x128xf32>
    %cst_11 = arith.constant 9.99999996E-13 : f32
    %22 = vector.broadcast %cst_11 : f32 to vector<32x1xf32>
    %23 = arith.addf %19, %22 : vector<32x1xf32>
    %24 = math.rsqrt %23 : vector<32x1xf32>
    %25 = vector.broadcast %24 : vector<32x1xf32> to vector<32x128xf32>
    %26 = arith.mulf %21, %25 : vector<32x128xf32>
    %c0_12 = arith.constant 0 : index
    %c0_13 = arith.constant 0 : index
    %27 = vector.load %arg6[%c0_12, %c0_13] : memref<1x128xf32, #tpu.memory_space<vmem>>, vector<1x128xf32>
    %28 = vector.broadcast %27 : vector<1x128xf32> to vector<32x128xf32>
    %29 = arith.mulf %26, %28 : vector<32x128xf32>
    %c0_14 = arith.constant 0 : index
    %c0_15 = arith.constant 0 : index
    %30 = vector.load %arg7[%c0_14, %c0_15] : memref<1x128xf32, #tpu.memory_space<vmem>>, vector<1x128xf32>
    %31 = vector.broadcast %30 : vector<1x128xf32> to vector<32x128xf32>
    %32 = arith.addf %29, %31 : vector<32x128xf32>
    %33 = arith.truncf %32 : vector<32x128xf32> to vector<32x128xbf16>
    %c0_16 = arith.constant 0 : index
    %c0_17 = arith.constant 0 : index
    %34 = vector.load %arg8[%c0_16, %c0_17] : memref<32x128xbf16, #tpu.memory_space<vmem>>, vector<32x128xbf16>
    tpu.vector_store %arg8[%c0_16, %c0_17], %33 {strides = array<i32>} : memref<32x128xbf16, #tpu.memory_space<vmem>>, vector<32x128xbf16>,
    return
  }
  func.func @transform_0(%arg0: i32, %arg1: i32) -> (i32, i32) {
    %c0_i32 = arith.constant 0 : i32
    %c0_i32_0 = arith.constant 0 : i32
    return %arg0, %c0_i32 : i32, i32
  }
  func.func @transform_1(%arg0: i32, %arg1: i32) -> (i32, i32) {
    %c0_i32 = arith.constant 0 : i32
    %c0_i32_0 = arith.constant 0 : i32
    return %c0_i32, %arg1 : i32, i32
  }
  func.func @transform_2(%arg0: i32, %arg1: i32) -> (i32, i32) {
    %c0_i32 = arith.constant 0 : i32
    %c0_i32_0 = arith.constant 0 : i32
    return %c0_i32, %arg1 : i32, i32
  }
  func.func @transform_3(%arg0: i32, %arg1: i32) -> (i32, i32) {
    %c0_i32 = arith.constant 0 : i32
    return %arg0, %arg1 : i32, i32
  }
  func.func @transform_4(%arg0: i32, %arg1: i32) -> (i32, i32) {
    %c0_i32 = arith.constant 0 : i32
    %c0_i32_0 = arith.constant 0 : i32
    return %c0_i32, %arg1 : i32, i32
  }
  func.func @transform_5(%arg0: i32, %arg1: i32) -> (i32, i32) {
    %c0_i32 = arith.constant 0 : i32
    %c0_i32_0 = arith.constant 0 : i32
    return %c0_i32, %arg1 : i32, i32
  }
  func.func @transform_6(%arg0: i32, %arg1: i32) -> (i32, i32) {
    %c0_i32 = arith.constant 0 : i32
    return %arg0, %arg1 : i32, i32
  }
}

module attributes {stable_mosaic.version = 11 : i64} {
  func.func @_attention_kernel(%arg0: i32, %arg1: memref<16x128xbf16, #tpu.memory_space<vmem>>, %arg2: memref<16x128xbf16, #tpu.memory_space<vmem>>, %arg3: memref<16x128xbf16, #tpu.memory_space<vmem>>, %arg4: memref<1x1x16xf32, #tpu.memory_space<vmem>>, %arg5: memref<16x128xbf16, #tpu.memory_space<vmem>>) attributes {dimension_semantics = [#tpu.dimension_semantics<parallel>], iteration_bounds = array<i64: 2>, scalar_prefetch = 0 : i64, scratch_operands = 0 : i64, tpu.core_type = #tpu.core_type<tc>, window_params = [{transform_indices = @transform_0, window_bounds = array<i64: 16, 128>}, {transform_indices = @transform_1, window_bounds = array<i64: 16, 128>}, {transform_indices = @transform_2, window_bounds = array<i64: 16, 128>}, {transform_indices = @transform_3, window_bounds = array<i64: 1, 1, 16>}, {transform_indices = @transform_4, window_bounds = array<i64: 16, 128>}]} {
    %c0 = arith.constant 0 : index
    %c0_0 = arith.constant 0 : index
    %c0_1 = arith.constant 0 : index
    %0 = vector.load %arg4[%c0, %c0_0, %c0_1] : memref<1x1x16xf32, #tpu.memory_space<vmem>>, vector<1x1x16xf32>
    %1 = vector.shape_cast %0 : vector<1x1x16xf32> to vector<1x16xf32>
    %cst = arith.constant 1.000000e+00 : f32
    %2 = vector.broadcast %cst : f32 to vector<1x16xf32>
    %3 = arith.subf %2, %1 : vector<1x16xf32>
    %cst_2 = arith.constant -1.000000e+09 : f32
    %4 = vector.broadcast %cst_2 : f32 to vector<1x16xf32>
    %5 = arith.mulf %3, %4 : vector<1x16xf32>
    %c0_3 = arith.constant 0 : index
    %c0_4 = arith.constant 0 : index
    %6 = vector.load %arg1[%c0_3, %c0_4] : memref<16x128xbf16, #tpu.memory_space<vmem>>, vector<16x128xbf16>
    %c0_5 = arith.constant 0 : index
    %c0_6 = arith.constant 0 : index
    %7 = vector.load %arg2[%c0_5, %c0_6] : memref<16x128xbf16, #tpu.memory_space<vmem>>, vector<16x128xbf16>
    %c0_7 = arith.constant 0 : index
    %c0_8 = arith.constant 0 : index
    %8 = vector.load %arg3[%c0_7, %c0_8] : memref<16x128xbf16, #tpu.memory_space<vmem>>, vector<16x128xbf16>
    %9 = vector.extract_strided_slice %6 {offsets = [0, 0], sizes = [16, 32], strides = [1, 1]} : vector<16x128xbf16> to vector<16x32xbf16>
    %10 = vector.extract_strided_slice %7 {offsets = [0, 0], sizes = [16, 32], strides = [1, 1]} : vector<16x128xbf16> to vector<16x32xbf16>
    %11 = vector.extract_strided_slice %8 {offsets = [0, 0], sizes = [16, 32], strides = [1, 1]} : vector<16x128xbf16> to vector<16x32xbf16>
    %cst_9 = arith.constant dense<0.000000e+00> : vector<16x16xf32>
    %12 = tpu.matmul %9, %10, %cst_9 {dimension_numbers = #tpu.dot_dimension_numbers<[1], [1], [0], [0], [0, 0, 1, 0], [], []>} : vector<16x32xbf16>, vector<16x32xbf16>, vector<16x16xf32> -> vector<16x16xf32>
    %cst_10 = arith.constant 0.176776692 : f32
    %13 = vector.broadcast %cst_10 : f32 to vector<16x16xf32>
    %14 = arith.mulf %12, %13 : vector<16x16xf32>
    %15 = vector.broadcast %5 : vector<1x16xf32> to vector<16x16xf32>
    %16 = arith.addf %14, %15 : vector<16x16xf32>
    %cst_11 = arith.constant dense<0xFF800000> : vector<16xf32>
    %17 = vector.multi_reduction <maximumf>, %16, %cst_11 [1] : vector<16x16xf32> to vector<16xf32>
    %18 = vector.shape_cast %17 : vector<16xf32> to vector<16x1xf32>
    %19 = vector.broadcast %18 : vector<16x1xf32> to vector<16x16xf32>
    %20 = arith.subf %16, %19 : vector<16x16xf32>
    %21 = math.exp %20 : vector<16x16xf32>
    %cst_12 = arith.constant dense<0.000000e+00> : vector<16xf32>
    %22 = vector.multi_reduction <add>, %21, %cst_12 [1] : vector<16x16xf32> to vector<16xf32>
    %23 = vector.shape_cast %22 : vector<16xf32> to vector<16x1xf32>
    %24 = tpu.reciprocal %23 {approx = true} : vector<16x1xf32> -> vector<16x1xf32>
    %25 = vector.broadcast %24 : vector<16x1xf32> to vector<16x16xf32>
    %26 = arith.mulf %21, %25 : vector<16x16xf32>
    %27 = arith.truncf %26 : vector<16x16xf32> to vector<16x16xbf16>
    %cst_13 = arith.constant dense<0.000000e+00> : vector<16x32xf32>
    %28 = tpu.matmul %27, %11, %cst_13 {dimension_numbers = #tpu.dot_dimension_numbers<[1], [0], [0], [1], [0, 0, 1, 1], [], []>} : vector<16x16xbf16>, vector<16x32xbf16>, vector<16x32xf32> -> vector<16x32xf32>
    %29 = vector.extract_strided_slice %6 {offsets = [0, 32], sizes = [16, 32], strides = [1, 1]} : vector<16x128xbf16> to vector<16x32xbf16>
    %30 = vector.extract_strided_slice %7 {offsets = [0, 32], sizes = [16, 32], strides = [1, 1]} : vector<16x128xbf16> to vector<16x32xbf16>
    %31 = vector.extract_strided_slice %8 {offsets = [0, 32], sizes = [16, 32], strides = [1, 1]} : vector<16x128xbf16> to vector<16x32xbf16>
    %cst_14 = arith.constant dense<0.000000e+00> : vector<16x16xf32>
    %32 = tpu.matmul %29, %30, %cst_14 {dimension_numbers = #tpu.dot_dimension_numbers<[1], [1], [0], [0], [0, 0, 1, 0], [], []>} : vector<16x32xbf16>, vector<16x32xbf16>, vector<16x16xf32> -> vector<16x16xf32>
    %cst_15 = arith.constant 0.176776692 : f32
    %33 = vector.broadcast %cst_15 : f32 to vector<16x16xf32>
    %34 = arith.mulf %32, %33 : vector<16x16xf32>
    %35 = vector.broadcast %5 : vector<1x16xf32> to vector<16x16xf32>
    %36 = arith.addf %34, %35 : vector<16x16xf32>
    %cst_16 = arith.constant dense<0xFF800000> : vector<16xf32>
    %37 = vector.multi_reduction <maximumf>, %36, %cst_16 [1] : vector<16x16xf32> to vector<16xf32>
    %38 = vector.shape_cast %37 : vector<16xf32> to vector<16x1xf32>
    %39 = vector.broadcast %38 : vector<16x1xf32> to vector<16x16xf32>
    %40 = arith.subf %36, %39 : vector<16x16xf32>
    %41 = math.exp %40 : vector<16x16xf32>
    %cst_17 = arith.constant dense<0.000000e+00> : vector<16xf32>
    %42 = vector.multi_reduction <add>, %41, %cst_17 [1] : vector<16x16xf32> to vector<16xf32>
    %43 = vector.shape_cast %42 : vector<16xf32> to vector<16x1xf32>
    %44 = tpu.reciprocal %43 {approx = true} : vector<16x1xf32> -> vector<16x1xf32>
    %45 = vector.broadcast %44 : vector<16x1xf32> to vector<16x16xf32>
    %46 = arith.mulf %41, %45 : vector<16x16xf32>
    %47 = arith.truncf %46 : vector<16x16xf32> to vector<16x16xbf16>
    %cst_18 = arith.constant dense<0.000000e+00> : vector<16x32xf32>
    %48 = tpu.matmul %47, %31, %cst_18 {dimension_numbers = #tpu.dot_dimension_numbers<[1], [0], [0], [1], [0, 0, 1, 1], [], []>} : vector<16x16xbf16>, vector<16x32xbf16>, vector<16x32xf32> -> vector<16x32xf32>
    %49 = vector.extract_strided_slice %6 {offsets = [0, 64], sizes = [16, 32], strides = [1, 1]} : vector<16x128xbf16> to vector<16x32xbf16>
    %50 = vector.extract_strided_slice %7 {offsets = [0, 64], sizes = [16, 32], strides = [1, 1]} : vector<16x128xbf16> to vector<16x32xbf16>
    %51 = vector.extract_strided_slice %8 {offsets = [0, 64], sizes = [16, 32], strides = [1, 1]} : vector<16x128xbf16> to vector<16x32xbf16>
    %cst_19 = arith.constant dense<0.000000e+00> : vector<16x16xf32>
    %52 = tpu.matmul %49, %50, %cst_19 {dimension_numbers = #tpu.dot_dimension_numbers<[1], [1], [0], [0], [0, 0, 1, 0], [], []>} : vector<16x32xbf16>, vector<16x32xbf16>, vector<16x16xf32> -> vector<16x16xf32>
    %cst_20 = arith.constant 0.176776692 : f32
    %53 = vector.broadcast %cst_20 : f32 to vector<16x16xf32>
    %54 = arith.mulf %52, %53 : vector<16x16xf32>
    %55 = vector.broadcast %5 : vector<1x16xf32> to vector<16x16xf32>
    %56 = arith.addf %54, %55 : vector<16x16xf32>
    %cst_21 = arith.constant dense<0xFF800000> : vector<16xf32>
    %57 = vector.multi_reduction <maximumf>, %56, %cst_21 [1] : vector<16x16xf32> to vector<16xf32>
    %58 = vector.shape_cast %57 : vector<16xf32> to vector<16x1xf32>
    %59 = vector.broadcast %58 : vector<16x1xf32> to vector<16x16xf32>
    %60 = arith.subf %56, %59 : vector<16x16xf32>
    %61 = math.exp %60 : vector<16x16xf32>
    %cst_22 = arith.constant dense<0.000000e+00> : vector<16xf32>
    %62 = vector.multi_reduction <add>, %61, %cst_22 [1] : vector<16x16xf32> to vector<16xf32>
    %63 = vector.shape_cast %62 : vector<16xf32> to vector<16x1xf32>
    %64 = tpu.reciprocal %63 {approx = true} : vector<16x1xf32> -> vector<16x1xf32>
    %65 = vector.broadcast %64 : vector<16x1xf32> to vector<16x16xf32>
    %66 = arith.mulf %61, %65 : vector<16x16xf32>
    %67 = arith.truncf %66 : vector<16x16xf32> to vector<16x16xbf16>
    %cst_23 = arith.constant dense<0.000000e+00> : vector<16x32xf32>
    %68 = tpu.matmul %67, %51, %cst_23 {dimension_numbers = #tpu.dot_dimension_numbers<[1], [0], [0], [1], [0, 0, 1, 1], [], []>} : vector<16x16xbf16>, vector<16x32xbf16>, vector<16x32xf32> -> vector<16x32xf32>
    %69 = vector.extract_strided_slice %6 {offsets = [0, 96], sizes = [16, 32], strides = [1, 1]} : vector<16x128xbf16> to vector<16x32xbf16>
    %70 = vector.extract_strided_slice %7 {offsets = [0, 96], sizes = [16, 32], strides = [1, 1]} : vector<16x128xbf16> to vector<16x32xbf16>
    %71 = vector.extract_strided_slice %8 {offsets = [0, 96], sizes = [16, 32], strides = [1, 1]} : vector<16x128xbf16> to vector<16x32xbf16>
    %cst_24 = arith.constant dense<0.000000e+00> : vector<16x16xf32>
    %72 = tpu.matmul %69, %70, %cst_24 {dimension_numbers = #tpu.dot_dimension_numbers<[1], [1], [0], [0], [0, 0, 1, 0], [], []>} : vector<16x32xbf16>, vector<16x32xbf16>, vector<16x16xf32> -> vector<16x16xf32>
    %cst_25 = arith.constant 0.176776692 : f32
    %73 = vector.broadcast %cst_25 : f32 to vector<16x16xf32>
    %74 = arith.mulf %72, %73 : vector<16x16xf32>
    %75 = vector.broadcast %5 : vector<1x16xf32> to vector<16x16xf32>
    %76 = arith.addf %74, %75 : vector<16x16xf32>
    %cst_26 = arith.constant dense<0xFF800000> : vector<16xf32>
    %77 = vector.multi_reduction <maximumf>, %76, %cst_26 [1] : vector<16x16xf32> to vector<16xf32>
    %78 = vector.shape_cast %77 : vector<16xf32> to vector<16x1xf32>
    %79 = vector.broadcast %78 : vector<16x1xf32> to vector<16x16xf32>
    %80 = arith.subf %76, %79 : vector<16x16xf32>
    %81 = math.exp %80 : vector<16x16xf32>
    %cst_27 = arith.constant dense<0.000000e+00> : vector<16xf32>
    %82 = vector.multi_reduction <add>, %81, %cst_27 [1] : vector<16x16xf32> to vector<16xf32>
    %83 = vector.shape_cast %82 : vector<16xf32> to vector<16x1xf32>
    %84 = tpu.reciprocal %83 {approx = true} : vector<16x1xf32> -> vector<16x1xf32>
    %85 = vector.broadcast %84 : vector<16x1xf32> to vector<16x16xf32>
    %86 = arith.mulf %81, %85 : vector<16x16xf32>
    %87 = arith.truncf %86 : vector<16x16xf32> to vector<16x16xbf16>
    %cst_28 = arith.constant dense<0.000000e+00> : vector<16x32xf32>
    %88 = tpu.matmul %87, %71, %cst_28 {dimension_numbers = #tpu.dot_dimension_numbers<[1], [0], [0], [1], [0, 0, 1, 1], [], []>} : vector<16x16xbf16>, vector<16x32xbf16>, vector<16x32xf32> -> vector<16x32xf32>
    %89 = tpu.concatenate %28, %48, %68, %88 in 1 : vector<16x32xf32>, vector<16x32xf32>, vector<16x32xf32>, vector<16x32xf32> -> vector<16x128xf32>
    %90 = arith.truncf %89 : vector<16x128xf32> to vector<16x128xbf16>
    %c0_29 = arith.constant 0 : index
    %c0_30 = arith.constant 0 : index
    %91 = vector.load %arg5[%c0_29, %c0_30] : memref<16x128xbf16, #tpu.memory_space<vmem>>, vector<16x128xbf16>
    tpu.vector_store %arg5[%c0_29, %c0_30], %90 {strides = array<i32>} : memref<16x128xbf16, #tpu.memory_space<vmem>>, vector<16x128xbf16>,
    return
  }
  func.func @transform_0(%arg0: i32) -> (i32, i32) {
    %c0_i32 = arith.constant 0 : i32
    %c0_i32_0 = arith.constant 0 : i32
    return %arg0, %c0_i32 : i32, i32
  }
  func.func @transform_1(%arg0: i32) -> (i32, i32) {
    %c1_i32 = arith.constant 1 : i32
    %c0_i32 = arith.constant 0 : i32
    return %arg0, %c1_i32 : i32, i32
  }
  func.func @transform_2(%arg0: i32) -> (i32, i32) {
    %c2_i32 = arith.constant 2 : i32
    %c0_i32 = arith.constant 0 : i32
    return %arg0, %c2_i32 : i32, i32
  }
  func.func @transform_3(%arg0: i32) -> (i32, i32, i32) {
    %c0_i32 = arith.constant 0 : i32
    %c0_i32_0 = arith.constant 0 : i32
    %c0_i32_1 = arith.constant 0 : i32
    return %arg0, %c0_i32, %c0_i32_0 : i32, i32, i32
  }
  func.func @transform_4(%arg0: i32) -> (i32, i32) {
    %c0_i32 = arith.constant 0 : i32
    %c0_i32_0 = arith.constant 0 : i32
    return %arg0, %c0_i32 : i32, i32
  }
}

module attributes {stable_mosaic.version = 11 : i64} {
  func.func @_dense_kernel_1k(%arg0: i32, %arg1: i32, %arg2: memref<32x512xbf16, #tpu.memory_space<vmem>>, %arg3: memref<512x128xbf16, #tpu.memory_space<vmem>>, %arg4: memref<1x128xf32, #tpu.memory_space<vmem>>, %arg5: memref<32x128xbf16, #tpu.memory_space<vmem>>, %arg6: memref<1x128xf32, #tpu.memory_space<vmem>>, %arg7: memref<1x128xf32, #tpu.memory_space<vmem>>, %arg8: memref<32x128xbf16, #tpu.memory_space<vmem>>) attributes {dimension_semantics = [#tpu.dimension_semantics<parallel>, #tpu.dimension_semantics<parallel>], iteration_bounds = array<i64: 1, 1>, scalar_prefetch = 0 : i64, scratch_operands = 0 : i64, tpu.core_type = #tpu.core_type<tc>, window_params = [{transform_indices = @transform_0, window_bounds = array<i64: 32, 512>}, {transform_indices = @transform_1, window_bounds = array<i64: 512, 128>}, {transform_indices = @transform_2, window_bounds = array<i64: 1, 128>}, {transform_indices = @transform_3, window_bounds = array<i64: 32, 128>}, {transform_indices = @transform_4, window_bounds = array<i64: 1, 128>}, {transform_indices = @transform_5, window_bounds = array<i64: 1, 128>}, {transform_indices = @transform_6, window_bounds = array<i64: 32, 128>}]} {
    %c0 = arith.constant 0 : index
    %c0_0 = arith.constant 0 : index
    %0 = vector.load %arg2[%c0, %c0_0] : memref<32x512xbf16, #tpu.memory_space<vmem>>, vector<32x512xbf16>
    %c0_1 = arith.constant 0 : index
    %c0_2 = arith.constant 0 : index
    %1 = vector.load %arg3[%c0_1, %c0_2] : memref<512x128xbf16, #tpu.memory_space<vmem>>, vector<512x128xbf16>
    %cst = arith.constant dense<0.000000e+00> : vector<32x128xf32>
    %2 = tpu.matmul %0, %1, %cst {dimension_numbers = #tpu.dot_dimension_numbers<[1], [0], [0], [1], [0, 0, 1, 1], [], []>} : vector<32x512xbf16>, vector<512x128xbf16>, vector<32x128xf32> -> vector<32x128xf32>
    %c0_3 = arith.constant 0 : index
    %c0_4 = arith.constant 0 : index
    %3 = vector.load %arg4[%c0_3, %c0_4] : memref<1x128xf32, #tpu.memory_space<vmem>>, vector<1x128xf32>
    %4 = vector.broadcast %3 : vector<1x128xf32> to vector<32x128xf32>
    %5 = arith.addf %2, %4 : vector<32x128xf32>
    %c0_5 = arith.constant 0 : index
    %c0_6 = arith.constant 0 : index
    %6 = vector.load %arg5[%c0_5, %c0_6] : memref<32x128xbf16, #tpu.memory_space<vmem>>, vector<32x128xbf16>
    %7 = arith.extf %6 : vector<32x128xbf16> to vector<32x128xf32>
    %8 = arith.addf %5, %7 : vector<32x128xf32>
    %cst_7 = arith.constant dense<0.000000e+00> : vector<32xf32>
    %9 = vector.multi_reduction <add>, %8, %cst_7 [1] : vector<32x128xf32> to vector<32xf32>
    %10 = vector.shape_cast %9 : vector<32xf32> to vector<32x1xf32>
    %cst_8 = arith.constant 1.280000e+02 : f32
    %11 = vector.broadcast %cst_8 : f32 to vector<32x1xf32>
    %12 = arith.divf %10, %11 : vector<32x1xf32>
    %13 = vector.broadcast %12 : vector<32x1xf32> to vector<32x128xf32>
    %14 = arith.subf %8, %13 : vector<32x128xf32>
    %15 = arith.mulf %14, %14 : vector<32x128xf32>
    %cst_9 = arith.constant dense<0.000000e+00> : vector<32xf32>
    %16 = vector.multi_reduction <add>, %15, %cst_9 [1] : vector<32x128xf32> to vector<32xf32>
    %17 = vector.shape_cast %16 : vector<32xf32> to vector<32x1xf32>
    %cst_10 = arith.constant 1.280000e+02 : f32
    %18 = vector.broadcast %cst_10 : f32 to vector<32x1xf32>
    %19 = arith.divf %17, %18 : vector<32x1xf32>
    %20 = vector.broadcast %12 : vector<32x1xf32> to vector<32x128xf32>
    %21 = arith.subf %8, %20 : vector<32x128xf32>
    %cst_11 = arith.constant 9.99999996E-13 : f32
    %22 = vector.broadcast %cst_11 : f32 to vector<32x1xf32>
    %23 = arith.addf %19, %22 : vector<32x1xf32>
    %24 = math.rsqrt %23 : vector<32x1xf32>
    %25 = vector.broadcast %24 : vector<32x1xf32> to vector<32x128xf32>
    %26 = arith.mulf %21, %25 : vector<32x128xf32>
    %c0_12 = arith.constant 0 : index
    %c0_13 = arith.constant 0 : index
    %27 = vector.load %arg6[%c0_12, %c0_13] : memref<1x128xf32, #tpu.memory_space<vmem>>, vector<1x128xf32>
    %28 = vector.broadcast %27 : vector<1x128xf32> to vector<32x128xf32>
    %29 = arith.mulf %26, %28 : vector<32x128xf32>
    %c0_14 = arith.constant 0 : index
    %c0_15 = arith.constant 0 : index
    %30 = vector.load %arg7[%c0_14, %c0_15] : memref<1x128xf32, #tpu.memory_space<vmem>>, vector<1x128xf32>
    %31 = vector.broadcast %30 : vector<1x128xf32> to vector<32x128xf32>
    %32 = arith.addf %29, %31 : vector<32x128xf32>
    %33 = arith.truncf %32 : vector<32x128xf32> to vector<32x128xbf16>
    %c0_16 = arith.constant 0 : index
    %c0_17 = arith.constant 0 : index
    %34 = vector.load %arg8[%c0_16, %c0_17] : memref<32x128xbf16, #tpu.memory_space<vmem>>, vector<32x128xbf16>
    tpu.vector_store %arg8[%c0_16, %c0_17], %33 {strides = array<i32>} : memref<32x128xbf16, #tpu.memory_space<vmem>>, vector<32x128xbf16>,
    return
  }
  func.func @transform_0(%arg0: i32, %arg1: i32) -> (i32, i32) {
    %c0_i32 = arith.constant 0 : i32
    %c0_i32_0 = arith.constant 0 : i32
    return %arg0, %c0_i32 : i32, i32
  }
  func.func @transform_1(%arg0: i32, %arg1: i32) -> (i32, i32) {
    %c0_i32 = arith.constant 0 : i32
    %c0_i32_0 = arith.constant 0 : i32
    return %c0_i32, %arg1 : i32, i32
  }
  func.func @transform_2(%arg0: i32, %arg1: i32) -> (i32, i32) {
    %c0_i32 = arith.constant 0 : i32
    %c0_i32_0 = arith.constant 0 : i32
    return %c0_i32, %arg1 : i32, i32
  }
  func.func @transform_3(%arg0: i32, %arg1: i32) -> (i32, i32) {
    %c0_i32 = arith.constant 0 : i32
    return %arg0, %arg1 : i32, i32
  }
  func.func @transform_4(%arg0: i32, %arg1: i32) -> (i32, i32) {
    %c0_i32 = arith.constant 0 : i32
    %c0_i32_0 = arith.constant 0 : i32
    return %c0_i32, %arg1 : i32, i32
  }
  func.func @transform_5(%arg0: i32, %arg1: i32) -> (i32, i32) {
    %c0_i32 = arith.constant 0 : i32
    %c0_i32_0 = arith.constant 0 : i32
    return %c0_i32, %arg1 : i32, i32
  }
  func.func @transform_6(%arg0: i32, %arg1: i32) -> (i32, i32) {
    %c0_i32 = arith.constant 0 : i32
    return %arg0, %arg1 : i32, i32
  }
}

module attributes {stable_mosaic.version = 11 : i64} {
  func.func @_dense_kernel_1k(%arg0: i32, %arg1: i32, %arg2: memref<32x128xbf16, #tpu.memory_space<vmem>>, %arg3: memref<128x512xbf16, #tpu.memory_space<vmem>>, %arg4: memref<1x512xf32, #tpu.memory_space<vmem>>, %arg5: memref<32x512xbf16, #tpu.memory_space<vmem>>) attributes {dimension_semantics = [#tpu.dimension_semantics<parallel>, #tpu.dimension_semantics<parallel>], iteration_bounds = array<i64: 1, 1>, scalar_prefetch = 0 : i64, scratch_operands = 0 : i64, tpu.core_type = #tpu.core_type<tc>, window_params = [{transform_indices = @transform_0, window_bounds = array<i64: 32, 128>}, {transform_indices = @transform_1, window_bounds = array<i64: 128, 512>}, {transform_indices = @transform_2, window_bounds = array<i64: 1, 512>}, {transform_indices = @transform_3, window_bounds = array<i64: 32, 512>}]} {
    %c0 = arith.constant 0 : index
    %c0_0 = arith.constant 0 : index
    %0 = vector.load %arg2[%c0, %c0_0] : memref<32x128xbf16, #tpu.memory_space<vmem>>, vector<32x128xbf16>
    %c0_1 = arith.constant 0 : index
    %c0_2 = arith.constant 0 : index
    %1 = vector.load %arg3[%c0_1, %c0_2] : memref<128x512xbf16, #tpu.memory_space<vmem>>, vector<128x512xbf16>
    %cst = arith.constant dense<0.000000e+00> : vector<32x512xf32>
    %2 = tpu.matmul %0, %1, %cst {dimension_numbers = #tpu.dot_dimension_numbers<[1], [0], [0], [1], [0, 0, 1, 1], [], []>} : vector<32x128xbf16>, vector<128x512xbf16>, vector<32x512xf32> -> vector<32x512xf32>
    %c0_3 = arith.constant 0 : index
    %c0_4 = arith.constant 0 : index
    %3 = vector.load %arg4[%c0_3, %c0_4] : memref<1x512xf32, #tpu.memory_space<vmem>>, vector<1x512xf32>
    %4 = vector.broadcast %3 : vector<1x512xf32> to vector<32x512xf32>
    %5 = arith.addf %2, %4 : vector<32x512xf32>
    %6 = arith.mulf %5, %5 : vector<32x512xf32>
    %7 = arith.mulf %5, %6 : vector<32x512xf32>
    %cst_5 = arith.constant 4.471500e-02 : f32
    %8 = vector.broadcast %cst_5 : f32 to vector<32x512xf32>
    %9 = arith.mulf %8, %7 : vector<32x512xf32>
    %10 = arith.addf %5, %9 : vector<32x512xf32>
    %cst_6 = arith.constant 0.797884583 : f32
    %11 = vector.broadcast %cst_6 : f32 to vector<32x512xf32>
    %12 = arith.mulf %11, %10 : vector<32x512xf32>
    %13 = math.tanh %12 : vector<32x512xf32>
    %cst_7 = arith.constant 1.000000e+00 : f32
    %14 = vector.broadcast %cst_7 : f32 to vector<32x512xf32>
    %15 = arith.addf %14, %13 : vector<32x512xf32>
    %cst_8 = arith.constant 5.000000e-01 : f32
    %16 = vector.broadcast %cst_8 : f32 to vector<32x512xf32>
    %17 = arith.mulf %16, %15 : vector<32x512xf32>
    %18 = arith.mulf %5, %17 : vector<32x512xf32>
    %19 = arith.truncf %18 : vector<32x512xf32> to vector<32x512xbf16>
    %c0_9 = arith.constant 0 : index
    %c0_10 = arith.constant 0 : index
    %20 = vector.load %arg5[%c0_9, %c0_10] : memref<32x512xbf16, #tpu.memory_space<vmem>>, vector<32x512xbf16>
    tpu.vector_store %arg5[%c0_9, %c0_10], %19 {strides = array<i32>} : memref<32x512xbf16, #tpu.memory_space<vmem>>, vector<32x512xbf16>,
    return
  }
  func.func @transform_0(%arg0: i32, %arg1: i32) -> (i32, i32) {
    %c0_i32 = arith.constant 0 : i32
    %c0_i32_0 = arith.constant 0 : i32
    return %arg0, %c0_i32 : i32, i32
  }
  func.func @transform_1(%arg0: i32, %arg1: i32) -> (i32, i32) {
    %c0_i32 = arith.constant 0 : i32
    %c0_i32_0 = arith.constant 0 : i32
    return %c0_i32, %arg1 : i32, i32
  }
  func.func @transform_2(%arg0: i32, %arg1: i32) -> (i32, i32) {
    %c0_i32 = arith.constant 0 : i32
    %c0_i32_0 = arith.constant 0 : i32
    return %c0_i32, %arg1 : i32, i32
  }
  func.func @transform_3(%arg0: i32, %arg1: i32) -> (i32, i32) {
    %c0_i32 = arith.constant 0 : i32
    return %arg0, %arg1 : i32, i32
  }
}

module attributes {stable_mosaic.version = 11 : i64} {
  func.func @_mean_pool_kernel(%arg0: i32, %arg1: memref<2x16x128xbf16, #tpu.memory_space<vmem>>, %arg2: memref<2x16x1xf32, #tpu.memory_space<vmem>>, %arg3: memref<2x128xf32, #tpu.memory_space<vmem>>) attributes {dimension_semantics = [#tpu.dimension_semantics<arbitrary>], iteration_bounds = array<i64: 1>, scalar_prefetch = 0 : i64, scratch_operands = 0 : i64, tpu.core_type = #tpu.core_type<tc>, window_params = [{pipeline_mode = #tpu.pipeline_mode<synchronous>, transform_indices = @transform_0, window_bounds = array<i64: 2, 16, 128>}, {pipeline_mode = #tpu.pipeline_mode<synchronous>, transform_indices = @transform_1, window_bounds = array<i64: 2, 16, 1>}, {pipeline_mode = #tpu.pipeline_mode<synchronous>, transform_indices = @transform_2, window_bounds = array<i64: 2, 128>}]} {
    %c0 = arith.constant 0 : index
    %c0_0 = arith.constant 0 : index
    %c0_1 = arith.constant 0 : index
    %0 = vector.load %arg1[%c0, %c0_0, %c0_1] : memref<2x16x128xbf16, #tpu.memory_space<vmem>>, vector<2x16x128xbf16>
    %1 = arith.extf %0 : vector<2x16x128xbf16> to vector<2x16x128xf32>
    %c0_2 = arith.constant 0 : index
    %c0_3 = arith.constant 0 : index
    %c0_4 = arith.constant 0 : index
    %2 = vector.load %arg2[%c0_2, %c0_3, %c0_4] : memref<2x16x1xf32, #tpu.memory_space<vmem>>, vector<2x16x1xf32>
    %3 = vector.broadcast %2 : vector<2x16x1xf32> to vector<2x16x128xf32>
    %4 = arith.mulf %1, %3 : vector<2x16x128xf32>
    %cst = arith.constant dense<0.000000e+00> : vector<2x128xf32>
    %5 = vector.multi_reduction <add>, %4, %cst [1] : vector<2x16x128xf32> to vector<2x128xf32>
    %cst_5 = arith.constant dense<0.000000e+00> : vector<2x1xf32>
    %6 = vector.multi_reduction <add>, %2, %cst_5 [1] : vector<2x16x1xf32> to vector<2x1xf32>
    %cst_6 = arith.constant 9.99999971E-10 : f32
    %7 = vector.broadcast %cst_6 : f32 to vector<2x1xf32>
    %8 = arith.maximumf %6, %7 : vector<2x1xf32>
    %9 = vector.broadcast %8 : vector<2x1xf32> to vector<2x128xf32>
    %10 = arith.divf %5, %9 : vector<2x128xf32>
    %c0_7 = arith.constant 0 : index
    %c0_8 = arith.constant 0 : index
    %11 = vector.load %arg3[%c0_7, %c0_8] : memref<2x128xf32, #tpu.memory_space<vmem>>, vector<2x128xf32>
    tpu.vector_store %arg3[%c0_7, %c0_8], %10 {strides = array<i32>} : memref<2x128xf32, #tpu.memory_space<vmem>>, vector<2x128xf32>,
    return
  }
  func.func @transform_0(%arg0: i32) -> (i32, i32, i32) {
    %c0_i32 = arith.constant 0 : i32
    %c0_i32_0 = arith.constant 0 : i32
    %c0_i32_1 = arith.constant 0 : i32
    %c0_i32_2 = arith.constant 0 : i32
    return %c0_i32, %c0_i32_0, %c0_i32_1 : i32, i32, i32
  }
  func.func @transform_1(%arg0: i32) -> (i32, i32, i32) {
    %c0_i32 = arith.constant 0 : i32
    %c0_i32_0 = arith.constant 0 : i32
    %c0_i32_1 = arith.constant 0 : i32
    %c0_i32_2 = arith.constant 0 : i32
    return %c0_i32, %c0_i32_0, %c0_i32_1 : i32, i32, i32
  }
  func.func @transform_2(%arg0: i32) -> (i32, i32) {
    %c0_i32 = arith.constant 0 : i32
    %c0_i32_0 = arith.constant 0 : i32
    %c0_i32_1 = arith.constant 0 : i32
    return %c0_i32, %c0_i32_0 : i32, i32
  }
}

</mosaic_0001>

<bundles_post_ra>
// kernel: bert_for_sts.15
= control target key start
LH: loop header
LB: loop body
LE: loop exit
PB: predicated region body
PF: predicated region fallthrough
CT: control target
= control target key end

     0   :  { %s438_s1 = inlined_call_operand.vmem [shape: bf16[128,128], index: 1, kind: input, shape index: {}]   ;;  %s439_s0 = inlined_call_operand.vmem [shape: bf16[32,128], index: 0, kind: input, shape index: {}]   ;;  %s440_s3 = inlined_call_operand.vmem [shape: bf16[32,128], index: 3, kind: input, shape index: {}]   ;;  %s441_s2 = inlined_call_operand.vmem [shape: f32[1,128], index: 2, kind: input, shape index: {}]   ;;  %s442_s4 = inlined_call_operand.vmem [shape: f32[1,128], index: 4, kind: input, shape index: {}]   ;;  %s443_s5 = inlined_call_operand.vmem [shape: f32[1,128], index: 5, kind: input, shape index: {}]   ;;  %s444_s6 = inlined_call_operand.vmem [shape: bf16[32,128], index: 6, kind: output, shape index: {}]  }
   0x1   :  { %v334_v0 = vld [vmem:[%s438_s1 + $0x38] sm:$0xff]   ;;  %v335_v1 = vld [vmem:[%s438_s1 + $0x30] sm:$0xff]   ;;  %v336_v2 = vld [vmem:[%s438_s1 + $0x28] sm:$0xff]  }
   0x2   :  { %314 = vmatprep.subr.bf16.mxu0 %v334_v0  ;;  %v337_v3 = vld [vmem:[%s438_s1 + $0x20] sm:$0xff]   ;;  %v338_v5 = vld [vmem:[%s438_s1 + $0x18] sm:$0xff]   ;;  %v339_v6 = vld [vmem:[%s438_s1 + $0x10] sm:$0xff]  }
   0x3   :  { %315 = vmatpush3.bf16.msra.mxu0 %v334_v0  ;;  %v342_v4 = vld [vmem:[%s439_s0] sm:$0xff]   ;;  %v340_v7 = vld [vmem:[%s438_s1 + $0x8] sm:$0xff]  }
   0x4   :  { %316 = vmatprep.subr.bf16.mxu0 %v335_v1  ;;  %330 = vmatprep.mubr.bf16.mxu0 %v342_v4  ;;  %v341_v8 = vld [vmem:[%s438_s1] sm:$0xff]   ;;  %v343_v9 = vld [vmem:[%s439_s0 + $0x8] sm:$0xff]  }
   0x5   :  { %v302_v10 = vld [vmem:[%s440_s3 + $0x8] sm:$0xff]   ;;  %v263_v11 = vld [vmem:[%s441_s2] ss:$0 sm:$0xff] }
   0x6   :  { %v285_v12 = vld [vmem:[%s440_s3] sm:$0xff]   ;;  %v290_v13 = vunpack.c.l.bf16 %v302_v10  ;;  %v291_v20 = vunpack.c.h.bf16 %v302_v10 }
   0x7   :  { %317 = vmatpush3.bf16.msra.mxu0 %v335_v1  ;;  %v286_v16 = vunpack.c.l.bf16 %v285_v12  ;;  %v287_v24 = vunpack.c.h.bf16 %v285_v12  ;;  %v274_v59 = vld [vmem:[%s442_s4] ss:$0 sm:$0xff] }
   0x8   :  { %318 = vmatprep.subr.bf16.mxu0 %v336_v2  ;;  %v275_v0 = vld [vmem:[%s443_s5] ss:$0 sm:$0xff] }
   0xb   :  { %319 = vmatpush3.bf16.msra.mxu0 %v336_v2 }
   0xc   :  { %320 = vmatprep.subr.bf16.mxu0 %v337_v3 }
   0xf   :  { %321 = vmatpush3.bf16.msra.mxu0 %v337_v3 }
  0x10   :  { %322 = vmatprep.subr.bf16.mxu0 %v338_v5 }
  0x13   :  { %323 = vmatpush3.bf16.msra.mxu0 %v338_v5 }
  0x14   :  { %324 = vmatprep.subr.bf16.mxu0 %v339_v6 }
  0x17   :  { %325 = vmatpush3.bf16.msra.mxu0 %v339_v6 }
  0x18   :  { %326 = vmatprep.subr.bf16.mxu0 %v340_v7 }
  0x1b   :  { %327 = vmatpush3.bf16.msra.mxu0 %v340_v7 }
  0x1c   :  { %328 = vmatprep.subr.bf16.mxu0 %v341_v8 }
  0x1f   :  { %329 = vmatpush3.bf16.msra.mxu0 %v341_v8 }
  0x22   :  { %331 = vmatmul.mubr.bf16.vlgmr.msra.gmra.mxu0 %v343_v9 }
  0xe2   :  { %v332_v14 = vpop.f32.mrf.mxu0 }
  0xe3   :  { %v154_v15 = vadd.f32 %v332_v14, %v263_v11 }
  0xe4   :  { %v145_v17 = vpop.f32.mrf.mxu0 }
  0xe5   :  { %v146_v18 = vadd.f32 %v263_v11, %v145_v17  ;;  %v170_v19 = vadd.f32 %v290_v13, %v154_v15 }
  0xe6   :  { %v333_v21 = vpop.f32.mrf.mxu0 }
  0xe7   :  { %v157_v22 = vadd.f32 %v333_v21, %v263_v11  ;;  %176 = vadd.xlane.f32.xlu1 %v170_v19  ;;  %v168_v23 = vadd.f32 %v286_v16, %v146_v18 }
  0xe8   :  { %v148_v25 = vpop.f32.mrf.mxu0 }
  0xe9   :  { %v149_v26 = vadd.f32 %v263_v11, %v148_v25  ;;  %172 = vadd.xlane.f32.xlu0 %v168_v23  ;;  %v171_v27 = vadd.f32 %v291_v20, %v157_v22 }
  0xeb   :  { %178 = vadd.xlane.f32.xlu1 %v171_v27  ;;  %v169_v28 = vadd.f32 %v287_v24, %v149_v26 }
  0xed   :  { %174 = vadd.xlane.f32.xlu0 %v169_v28 }
 0x170   :  { %v177_v29 = vpop.xlane.xlu1 %176 }
 0x171   :  { %v183_v31 = vmul.f32 0.0078125, %v177_v29 }
 0x172   :  { %v173_v30 = vpop.xlane.xlu0 %172 }
 0x173   :  { %v181_v32 = vmul.f32 0.0078125, %v173_v30  ;;  %v187_v36 = vsub.f32 %v170_v19, %v183_v31 }
 0x174   :  { %v179_v33 = vpop.xlane.xlu1 %178 }
 0x175   :  { %v185_v34 = vsub.f32 %v168_v23, %v181_v32  ;;  %v184_v37 = vmul.f32 0.0078125, %v179_v33  ;;  %v191_v42 = vmul.f32 %v187_v36, %v187_v36 }
 0x176   :  { %v175_v35 = vpop.xlane.xlu0 %174 }
 0x177   :  { %v182_v38 = vmul.f32 0.0078125, %v175_v35  ;;  %v189_v39 = vmul.f32 %v185_v34, %v185_v34  ;;  %v188_v41 = vsub.f32 %v171_v27, %v184_v37 }
 0x179   :  { %v186_v40 = vsub.f32 %v169_v28, %v182_v38  ;;  %193 = vadd.xlane.f32.xlu0 %v189_v39  ;;  %v192_v44 = vmul.f32 %v188_v41, %v188_v41 }
 0x17b   :  { %v190_v43 = vmul.f32 %v186_v40, %v186_v40 }
 0x17d   :  { %197 = vadd.xlane.f32.xlu0 %v191_v42  ;;  %195 = vadd.xlane.f32.xlu1 %v190_v43 }
 0x181   :  { %199 = vadd.xlane.f32.xlu1 %v192_v44 }
 0x202   :  { %v194_v45 = vpop.xlane.xlu0 %193 }
 0x203   :  { %v201_v46 = vmul.f32 0.0078125, %v194_v45 }
 0x205   :  { %v205_v47 = vadd.f32 1e-12, %v201_v46 }
 0x206   :  { %v196_v48 = vpop.xlane.xlu1 %195  ;;  %v198_v49 = vpop.xlane.xlu0 %197 }
 0x207   :  { %344 = vrsqrt.f32 %v205_v47  ;;  %v202_v50 = vmul.f32 0.0078125, %v196_v48  ;;  %v203_v51 = vmul.f32 0.0078125, %v198_v49 }
 0x209   :  { %v206_v52 = vadd.f32 1e-12, %v202_v50  ;;  %v207_v53 = vadd.f32 1e-12, %v203_v51 }
 0x20a   :  { %v200_v54 = vpop.xlane.xlu1 %199 }
 0x20b   :  { %346 = vrsqrt.f32 %v206_v52  ;;  %v204_v55 = vmul.f32 0.0078125, %v200_v54 }
 0x20c   :  { %348 = vrsqrt.f32 %v207_v53 }
 0x20d   :  { %v208_v56 = vadd.f32 1e-12, %v204_v55 }
 0x20f   :  { %350 = vrsqrt.f32 %v208_v56 }
 0x214   :  { %v345_v57 = vpop.eup %344 }
 0x215   :  { %v213_v58 = vmul.f32 %v345_v57, %v185_v34 }
 0x217   :  { %v224_v62 = vmul.f32 %v274_v59, %v213_v58 }
 0x218   :  { %v347_v60 = vpop.eup %346 }
 0x219   :  { %v349_v61 = vpop.eup %348  ;;  %v214_v63 = vmul.f32 %v347_v60, %v186_v40  ;;  %v235_v4 = vadd.f32 %v275_v0, %v224_v62 }
 0x21a   :  { %v215_v1 = vmul.f32 %v349_v61, %v187_v36 }
 0x21b   :  { %v225_v2 = vmul.f32 %v274_v59, %v214_v63 }
 0x21c   :  { %v351_v3 = vpop.eup %350  ;;  %v226_v6 = vmul.f32 %v274_v59, %v215_v1 }
 0x21d   :  { %v236_v5 = vadd.f32 %v275_v0, %v225_v2  ;;  %v216_v7 = vmul.f32 %v351_v3, %v188_v41 }
 0x21e   :  { %v237_v10 = vadd.f32 %v275_v0, %v226_v6 }
 0x21f   :  { %v295_v8 = vpack.c.bf16 %v236_v5, %v235_v4  ;;  %v227_v9 = vmul.f32 %v274_v59, %v216_v7 }
 0x221   :  { %296 = vst [vmem:[%s444_s6] sm:$0xff] %v295_v8   ;;  %v238_v11 = vadd.f32 %v275_v0, %v227_v9 }
 0x223   :  { %v300_v12 = vpack.c.bf16 %v238_v11, %v237_v10 }
 0x225   :  { %303 = vst [vmem:[%s444_s6 + $0x8] sm:$0xff] %v300_v12  }

// kernel: bert_for_sts.12
= control target key start
LH: loop header
LB: loop body
LE: loop exit
PB: predicated region body
PF: predicated region fallthrough
CT: control target
= control target key end

     0   :  { %s210_s0 = inlined_call_operand.vmem [shape: f32[32,128], index: 0, kind: input, shape index: {}]   ;;  %s211_s1 = inlined_call_operand.vmem [shape: f32[32,128], index: 1, kind: input, shape index: {}]   ;;  %s212_s2 = inlined_call_operand.vmem [shape: f32[1,128], index: 2, kind: input, shape index: {}]   ;;  %s213_s3 = inlined_call_operand.vmem [shape: f32[1,128], index: 3, kind: input, shape index: {}]   ;;  %s214_s4 = inlined_call_operand.vmem [shape: bf16[32,128], index: 4, kind: output, shape index: {}]  }
   0x1   :  { %v17_v0 = vld [vmem:[%s210_s0] sm:$0xff]  ;;  %v19_v2 = vld [vmem:[%s210_s0 + $0x10] sm:$0xff]  ;;  %v18_v5 = vld [vmem:[%s210_s0 + $0x8] sm:$0xff] }
   0x2   :  { %v21_v1 = vld [vmem:[%s211_s1] sm:$0xff]  ;;  %v23_v4 = vld [vmem:[%s211_s1 + $0x10] sm:$0xff]  ;;  %v22_v6 = vld [vmem:[%s211_s1 + $0x8] sm:$0xff] }
   0x3   :  { %v25_v3 = vadd.f32 %v21_v1, %v17_v0  ;;  %v27_v7 = vadd.f32 %v23_v4, %v19_v2  ;;  %v20_v8 = vld [vmem:[%s210_s0 + $0x18] sm:$0xff]  ;;  %v26_v10 = vadd.f32 %v22_v6, %v18_v5  ;;  %v120_v42 = vld [vmem:[%s212_s2] ss:$0 sm:$0xff] }
   0x4   :  { %v24_v9 = vld [vmem:[%s211_s1 + $0x18] sm:$0xff]  ;;  %v121_v47 = vld [vmem:[%s213_s3] ss:$0 sm:$0xff] }
   0x5   :  { %29 = vadd.xlane.f32.xlu0 %v25_v3  ;;  %33 = vadd.xlane.f32.xlu1 %v27_v7  ;;  %v28_v11 = vadd.f32 %v24_v9, %v20_v8 }
   0x9   :  { %31 = vadd.xlane.f32.xlu0 %v26_v10  ;;  %35 = vadd.xlane.f32.xlu1 %v28_v11 }
  0x8e   :  { %v30_v12 = vpop.xlane.xlu0 %29  ;;  %v34_v14 = vpop.xlane.xlu1 %33 }
  0x8f   :  { %v38_v13 = vmul.f32 0.0078125, %v30_v12  ;;  %v40_v15 = vmul.f32 0.0078125, %v34_v14 }
  0x91   :  { %v42_v16 = vsub.f32 %v25_v3, %v38_v13  ;;  %v44_v17 = vsub.f32 %v27_v7, %v40_v15 }
  0x92   :  { %v32_v18 = vpop.xlane.xlu0 %31  ;;  %v36_v21 = vpop.xlane.xlu1 %35 }
  0x93   :  { %v39_v19 = vmul.f32 0.0078125, %v32_v18  ;;  %v46_v20 = vmul.f32 %v42_v16, %v42_v16  ;;  %v41_v22 = vmul.f32 0.0078125, %v36_v21  ;;  %v48_v24 = vmul.f32 %v44_v17, %v44_v17 }
  0x95   :  { %v43_v23 = vsub.f32 %v26_v10, %v39_v19  ;;  %50 = vadd.xlane.f32.xlu0 %v46_v20  ;;  %v45_v25 = vsub.f32 %v28_v11, %v41_v22 }
  0x97   :  { %v47_v26 = vmul.f32 %v43_v23, %v43_v23  ;;  %v49_v27 = vmul.f32 %v45_v25, %v45_v25 }
  0x99   :  { %54 = vadd.xlane.f32.xlu0 %v48_v24  ;;  %52 = vadd.xlane.f32.xlu1 %v47_v26 }
  0x9d   :  { %56 = vadd.xlane.f32.xlu1 %v49_v27 }
 0x11e   :  { %v51_v28 = vpop.xlane.xlu0 %50 }
 0x11f   :  { %v58_v29 = vmul.f32 0.0078125, %v51_v28 }
 0x121   :  { %v62_v30 = vadd.f32 1e-12, %v58_v29 }
 0x122   :  { %v53_v31 = vpop.xlane.xlu1 %52  ;;  %v55_v32 = vpop.xlane.xlu0 %54 }
 0x123   :  { %141 = vrsqrt.f32 %v62_v30  ;;  %v59_v33 = vmul.f32 0.0078125, %v53_v31  ;;  %v60_v34 = vmul.f32 0.0078125, %v55_v32 }
 0x125   :  { %v63_v35 = vadd.f32 1e-12, %v59_v33  ;;  %v64_v36 = vadd.f32 1e-12, %v60_v34 }
 0x126   :  { %v57_v37 = vpop.xlane.xlu1 %56 }
 0x127   :  { %143 = vrsqrt.f32 %v63_v35  ;;  %v61_v38 = vmul.f32 0.0078125, %v57_v37 }
 0x128   :  { %145 = vrsqrt.f32 %v64_v36 }
 0x129   :  { %v65_v39 = vadd.f32 1e-12, %v61_v38 }
 0x12b   :  { %147 = vrsqrt.f32 %v65_v39 }
 0x130   :  { %v142_v40 = vpop.eup %141 }
 0x131   :  { %v70_v41 = vmul.f32 %v142_v40, %v42_v16 }
 0x133   :  { %v81_v45 = vmul.f32 %v120_v42, %v70_v41 }
 0x134   :  { %v144_v43 = vpop.eup %143 }
 0x135   :  { %v146_v44 = vpop.eup %145  ;;  %v71_v46 = vmul.f32 %v144_v43, %v43_v23  ;;  %v92_v51 = vadd.f32 %v121_v47, %v81_v45 }
 0x136   :  { %v72_v48 = vmul.f32 %v146_v44, %v44_v17 }
 0x137   :  { %v82_v49 = vmul.f32 %v120_v42, %v71_v46 }
 0x138   :  { %v148_v50 = vpop.eup %147  ;;  %v83_v53 = vmul.f32 %v120_v42, %v72_v48 }
 0x139   :  { %v93_v52 = vadd.f32 %v121_v47, %v82_v49  ;;  %v73_v54 = vmul.f32 %v148_v50, %v45_v25 }
 0x13a   :  { %v94_v57 = vadd.f32 %v121_v47, %v83_v53 }
 0x13b   :  { %v133_v55 = vpack.c.bf16 %v93_v52, %v92_v51  ;;  %v84_v56 = vmul.f32 %v120_v42, %v73_v54 }
 0x13d   :  { %134 = vst [vmem:[%s214_s4] sm:$0xff] %v133_v55   ;;  %v95_v58 = vadd.f32 %v121_v47, %v84_v56 }
 0x13f   :  { %v138_v59 = vpack.c.bf16 %v95_v58, %v94_v57 }
 0x141   :  { %140 = vst [vmem:[%s214_s4 + $0x8] sm:$0xff] %v138_v59  }

// kernel: bert_for_sts.13
= control target key start
LH: loop header
LB: loop body
LE: loop exit
PB: predicated region body
PF: predicated region fallthrough
CT: control target
= control target key end

     0   :  { %v469_v1 = vmov 0   ;;  %v53_v27 = vlaneseq  ;;  %s595_s1 = inlined_call_operand.vmem [shape: bf16[128,384], index: 1, kind: input, shape index: {}]   ;;  %s596_s0 = inlined_call_operand.vmem [shape: bf16[32,128], index: 0, kind: input, shape index: {}]   ;;  %s597_s2 = inlined_call_operand.vmem [shape: f32[1,384], index: 2, kind: input, shape index: {}]   ;;  %s598_s3 = inlined_call_operand.vmem [shape: bf16[32,384], index: 3, kind: output, shape index: {}]  }
   0x1   :  { %v435_v0 = vld [vmem:[%s595_s1 + $0xac] ss:$12 sps:$4 sm:$0xff]   ;;  %240 = vmatprep.mubr.bf16.mxu0 %v469_v1  ;;  %v437_v2 = vld [vmem:[%s595_s1 + $0xa8] ss:$12 sps:$4 sm:$0xff]   ;;  %v438_v3 = vld [vmem:[%s595_s1 + $0xb0] ss:$12 sps:$4 sm:$0xff]  }
   0x2   :  { %208 = vmatprep.subr.bf16.mxu0 %v435_v0  ;;  %v439_v4 = vld [vmem:[%s595_s1 + $0x94] ss:$12 sps:$4 sm:$0xff]   ;;  %v441_v5 = vld [vmem:[%s595_s1 + $0x90] ss:$12 sps:$4 sm:$0xff]   ;;  %414 = vmatprep.subr.bf16.mxu1 %v438_v3  ;;  %v442_v6 = vld [vmem:[%s595_s1 + $0x98] ss:$12 sps:$4 sm:$0xff]  }
   0x3   :  { %209 = vmatpush1.bf16.msra.mxu0 %v437_v2  ;;  %415 = vmatpush3.bf16.msra.mxu1 %v438_v3  ;;  %v443_v7 = vld [vmem:[%s595_s1 + $0x7c] ss:$12 sps:$4 sm:$0xff]   ;;  %v446_v8 = vld [vmem:[%s595_s1 + $0x80] ss:$12 sps:$4 sm:$0xff]   ;;  %v445_v9 = vld [vmem:[%s595_s1 + $0x78] ss:$12 sps:$4 sm:$0xff]  }
   0x4   :  { %210 = vmatprep.subr.bf16.mxu0 %v439_v4  ;;  %416 = vmatprep.subr.bf16.mxu1 %v442_v6  ;;  %v447_v10 = vld [vmem:[%s595_s1 + $0x64] ss:$12 sps:$4 sm:$0xff]   ;;  %v450_v11 = vld [vmem:[%s595_s1 + $0x68] ss:$12 sps:$4 sm:$0xff]   ;;  %v449_v12 = vld [vmem:[%s595_s1 + $0x60] ss:$12 sps:$4 sm:$0xff]  }
   0x5   :  { %v451_v13 = vld [vmem:[%s595_s1 + $0x4c] ss:$12 sps:$4 sm:$0xff]   ;;  %v454_v14 = vld [vmem:[%s595_s1 + $0x50] ss:$12 sps:$4 sm:$0xff]   ;;  %v453_v15 = vld [vmem:[%s595_s1 + $0x48] ss:$12 sps:$4 sm:$0xff]  }
   0x6   :  { %v455_v16 = vld [vmem:[%s595_s1 + $0x34] ss:$12 sps:$4 sm:$0xff]   ;;  %v457_v17 = vld [vmem:[%s595_s1 + $0x30] ss:$12 sps:$4 sm:$0xff]   ;;  %v458_v18 = vld [vmem:[%s595_s1 + $0x38] ss:$12 sps:$4 sm:$0xff]  }
   0x7   :  { %211 = vmatpush1.bf16.msra.mxu0 %v441_v5  ;;  %417 = vmatpush3.bf16.msra.mxu1 %v442_v6  ;;  %v467_v19 = vld [vmem:[%s596_s0] sm:$0xff]   ;;  %v459_v20 = vld [vmem:[%s595_s1 + $0x1c] ss:$12 sps:$4 sm:$0xff]   ;;  %v54_v28 = vshrl.u32 %v53_v27, 7 }
   0x8   :  { %212 = vmatprep.subr.bf16.mxu0 %v443_v7  ;;  %418 = vmatprep.subr.bf16.mxu1 %v446_v8  ;;  %v462_v21 = vld [vmem:[%s595_s1 + $0x20] ss:$12 sps:$4 sm:$0xff]   ;;  %v461_v22 = vld [vmem:[%s595_s1 + $0x18] ss:$12 sps:$4 sm:$0xff]   ;;  %v466_v24 = vld [vmem:[%s595_s1 + $0x8] ss:$12 sps:$4 sm:$0xff]  }
   0x9   :  { %430 = vmatprep.mubr.bf16.mxu1 %v467_v19  ;;  %v463_v23 = vld [vmem:[%s595_s1 + $0x4] ss:$12 sps:$4 sm:$0xff]   ;;  %v465_v25 = vld [vmem:[%s595_s1] ss:$12 sps:$4 sm:$0xff]   ;;  %v55_v29 = vsub.s32 0, %v54_v28  ;;  %v59_v30 = vsub.s32 1, %v54_v28 }
   0xa   :  { %v468_v26 = vld [vmem:[%s596_s0 + $0x8] sm:$0xff]   ;;  %v63_v31 = vsub.s32 2, %v54_v28  ;;  %v51_v32 = vld [vmem:[%s597_s2] sm:$0x7] }
   0xb   :  { %213 = vmatpush1.bf16.msra.mxu0 %v445_v9  ;;  %419 = vmatpush3.bf16.msra.mxu1 %v446_v8  ;;  %v56_v33 = vrot.slane %v51_v32, %v55_v29  ;;  %v60_v34 = vrot.slane %v51_v32, %v59_v30 }
   0xc   :  { %214 = vmatprep.subr.bf16.mxu0 %v447_v10  ;;  %420 = vmatprep.subr.bf16.mxu1 %v450_v11  ;;  %v64_v35 = vrot.slane %v51_v32, %v63_v31 }
   0xf   :  { %215 = vmatpush1.bf16.msra.mxu0 %v449_v12  ;;  %421 = vmatpush3.bf16.msra.mxu1 %v450_v11 }
  0x10   :  { %216 = vmatprep.subr.bf16.mxu0 %v451_v13  ;;  %422 = vmatprep.subr.bf16.mxu1 %v454_v14 }
  0x13   :  { %217 = vmatpush1.bf16.msra.mxu0 %v453_v15  ;;  %423 = vmatpush3.bf16.msra.mxu1 %v454_v14 }
  0x14   :  { %218 = vmatprep.subr.bf16.mxu0 %v455_v16  ;;  %424 = vmatprep.subr.bf16.mxu1 %v458_v18 }
  0x17   :  { %219 = vmatpush1.bf16.msra.mxu0 %v457_v17  ;;  %425 = vmatpush3.bf16.msra.mxu1 %v458_v18 }
  0x18   :  { %220 = vmatprep.subr.bf16.mxu0 %v459_v20  ;;  %426 = vmatprep.subr.bf16.mxu1 %v462_v21 }
  0x1b   :  { %221 = vmatpush1.bf16.msra.mxu0 %v461_v22  ;;  %427 = vmatpush3.bf16.msra.mxu1 %v462_v21 }
  0x1c   :  { %222 = vmatprep.subr.bf16.mxu0 %v463_v23  ;;  %428 = vmatprep.subr.bf16.mxu1 %v466_v24 }
  0x1f   :  { %223 = vmatpush1.bf16.msra.mxu0 %v465_v25  ;;  %429 = vmatpush3.bf16.msra.mxu1 %v466_v24 }
  0x22   :  { %241 = vmatmul.mubr.bf16.vlgmr.msra.gmra.mxu0 %v467_v19  ;;  %431 = vmatmul.mubr.bf16.vlgmr.msra.gmra.mxu1 %v468_v26 }
  0x23   :  { %250 = vmatprep.mubr.bf16.mxu0 %v469_v1 }
  0x2a   :  { %251 = vmatmul.mubr.bf16.gmra.mxu0 %v468_v26 }
  0xe2   :  { %v242_v36 = vpop.f32.mrf.mxu0  ;;  %v432_v38 = vpop.f32.mrf.mxu1 }
  0xe3   :  { %v243_v39 = vadd.f32 %v242_v36, %v56_v33  ;;  %v304_v41 = vadd.f32 %v432_v38, %v64_v35 }
  0xe4   :  { %v244_v37 = vpop.f32.mrf.mxu0  ;;  %v295_v43 = vpop.f32.mrf.mxu1 }
  0xe5   :  { %v245_v40 = vadd.f32 %v244_v37, %v60_v34  ;;  %v401_v45 = vpack.c.bf16 %v304_v41, %v304_v41  ;;  %v296_v46 = vadd.f32 %v295_v43, %v64_v35 }
  0xe6   :  { %v246_v42 = vpop.f32.mrf.mxu0  ;;  %v433_v48 = vpop.f32.mrf.mxu1 }
  0xe7   :  { %v396_v44 = vpack.c.bf16 %v245_v40, %v243_v39  ;;  %355 = vst [vmem:[%s598_s3 + $0x20] sm:$0xf] %v401_v45  ;;  %v247_v49 = vadd.f32 %v246_v42, %v56_v33  ;;  %v397_v50 = vpack.c.bf16 %v296_v46, %v296_v46  ;;  %v307_v52 = vadd.f32 %v433_v48, %v64_v35 }
  0xe8   :  { %v248_v47 = vpop.f32.mrf.mxu0  ;;  %v298_v54 = vpop.f32.mrf.mxu1 }
  0xe9   :  { %350 = vst [vmem:[%s598_s3] sm:$0xff] %v396_v44  ;;  %v249_v51 = vadd.f32 %v248_v47, %v60_v34  ;;  %351 = vst [vmem:[%s598_s3 + $0x8] sm:$0xf] %v397_v50  ;;  %v403_v56 = vpack.c.bf16 %v307_v52, %v307_v52  ;;  %v299_v57 = vadd.f32 %v298_v54, %v64_v35 }
  0xea   :  { %v252_v53 = vpop.f32.mrf.mxu0 }
  0xeb   :  { %v398_v55 = vpack.c.bf16 %v249_v51, %v247_v49  ;;  %357 = vst [vmem:[%s598_s3 + $0x2c] sm:$0xf] %v403_v56  ;;  %v253_v59 = vadd.f32 %v252_v53, %v56_v33  ;;  %v399_v60 = vpack.c.bf16 %v299_v57, %v299_v57 }
  0xec   :  { %v254_v58 = vpop.f32.mrf.mxu0 }
  0xed   :  { %352 = vst [vmem:[%s598_s3 + $0xc] sm:$0xff] %v398_v55  ;;  %v255_v61 = vadd.f32 %v254_v58, %v60_v34  ;;  %353 = vst [vmem:[%s598_s3 + $0x14] sm:$0xf] %v399_v60 }
  0xee   :  { %v256_v62 = vpop.f32.mrf.mxu0 }
  0xef   :  { %v400_v63 = vpack.c.bf16 %v255_v61, %v253_v59  ;;  %v257_v1 = vadd.f32 %v256_v62, %v56_v33 }
  0xf0   :  { %v258_v0 = vpop.f32.mrf.mxu0 }
  0xf1   :  { %354 = vst [vmem:[%s598_s3 + $0x18] sm:$0xff] %v400_v63  ;;  %v259_v2 = vadd.f32 %v258_v0, %v60_v34 }
  0xf3   :  { %v402_v3 = vpack.c.bf16 %v259_v2, %v257_v1 }
  0xf5   :  { %356 = vst [vmem:[%s598_s3 + $0x24] sm:$0xff] %v402_v3 }

// kernel: bert_for_sts.14
= control target key start
LH: loop header
LB: loop body
LE: loop exit
PB: predicated region body
PF: predicated region fallthrough
CT: control target
= control target key end

     0   :  { %s1327_s15 = smov 0   ;;  %s1329_s16 = smov 0   ;;  %s1498_s0 = inlined_call_operand.vmem [shape: bf16[32,384], index: 0, kind: input, shape index: {}, may-alias: {0,1,2}]   ;;  %s1499_s1 = inlined_call_operand.vmem [shape: bf16[32,384], index: 1, kind: input, shape index: {}, may-alias: {0,1,2}]   ;;  %s1500_s2 = inlined_call_operand.vmem [shape: bf16[32,384], index: 2, kind: input, shape index: {}, may-alias: {0,1,2}]   ;;  %s1501_s3 = inlined_call_operand.vmem [shape: f32[2,1,16], index: 3, kind: input, shape index: {}]   ;;  %s1502_s4 = inlined_call_operand.vmem [shape: bf16[32,128], index: 4, kind: output, shape index: {}]  }
   0x1   :  { %s1331_s17 = smov 0  }
   0x2 LB: > { %s1343_s18 = sadd.s32 4294967295, %s1295_s17   ;;  %s1346_s19 = sadd.s32 1, %s1295_s17   ;;  %s1295_s17 = sphi %s1331_s17, %s1506_s17   ;;  %s1291_s16 = sphi %s1329_s16, %s1505_s16   ;;  %s1287_s15 = sphi %s1327_s15, %s1504_s15  }
   0x3   : > { %s18_s20 = ssub.s32 %s1295_s17, %s1346_s19  ;;  %s21_s21 = sadd.s32 1, %s1291_s16 }
   0x4   : > { %p19_p0 = scmp.eq.s32.totalorder %s18_s20, 0  ;;  %p28_p1 = scmp.ne.s32.totalorder %s1291_s16, %s1287_s15 }
   0x5   : > { %p29_p2 = scmp.eq.s32.totalorder %s1295_s17, 0  ;;  %p1088_p4 = scmp.ge.s32.totalorder %s1295_s17, 2 }
   0x6   : > { %s1355_s22 = scalar_select %p19_p0, %s1291_s16, %s21_s21  }
   0x7   : > { %p1357_p3 = por %p29_p2, %p28_p1  ;;  %158 = sbr.rel (%p1088_p4) target bundleno = 30 (0x1e), region = 16 }
   0xc   : > { %161 = sbr.rel (!%p1357_p3) target bundleno = 18 (0x12), region = 20  ;;  %s163_s24 = sand.u32 (%p1357_p3), 1, %s1291_s16  }
   0xd   : > { %s1193_s25 = smul.u32 (%p1357_p3), 24, %s1295_s17  ;;  %s1089_s26 = sshll.u32 (%p1357_p3), %s163_s24, 3 }
   0xe   : > { %s165_s30 = scalar_lea.vmem (%p1357_p3), [#allocation2], %s1089_s26 }
   0xf   : > { %s169_s29 = scalar_lea.vmem (%p1357_p3), %s1498_s0, %s1193_s25 }
  0x10   : > { %v186_v0 = vld [vmem:[%s169_s29] sm:$0xf] (%p1357_p3)  ;;  %v188_v1 = vld [vmem:[%s169_s29 + $0xc] sm:$0xf] (%p1357_p3) }
  0x11   : > { %187 = vst [vmem:[%s165_s30] sm:$0xf] %v186_v0  ;;  %189 = vst [vmem:[%s165_s30 + $0x4] sm:$0xf] %v188_v1 }
  0x12 PF: > { %217 = sbr.rel (!%p1357_p3) target bundleno = 24 (0x18), region = 61  ;;  %s219_s5 = sand.u32 (%p1357_p3), 1, %s1291_s16  }
  0x13   : > { %s1094_s6 = smul.u32 (%p1357_p3), 24, %s1295_s17  ;;  %s1093_s7 = sshll.u32 (%p1357_p3), %s219_s5, 3 }
  0x14   : > { %s221_s11 = scalar_lea.vmem (%p1357_p3), [#allocation3], %s1093_s7 }
  0x15   : > { %s1004_s10 = scalar_lea.vmem (%p1357_p3), %s1499_s1, %s1094_s6 }
  0x16   : > { %v1095_v2 = vld [vmem:[%s1004_s10 + $0x4] sm:$0xf] (%p1357_p3)  ;;  %v1096_v3 = vld [vmem:[%s1004_s10 + $0x10] sm:$0xf] (%p1357_p3) }
  0x17   : > { %244 = vst [vmem:[%s221_s11] sm:$0xf] %v1095_v2  ;;  %246 = vst [vmem:[%s221_s11 + $0x4] sm:$0xf] %v1096_v3 }
  0x18 PF: > { %274 = sbr.rel (!%p1357_p3) target bundleno = 30 (0x1e), region = 102  ;;  %s276_s12 = sand.u32 (%p1357_p3), 1, %s1291_s16  }
  0x19   : > { %s1098_s13 = smul.u32 (%p1357_p3), 24, %s1295_s17  ;;  %s1097_s14 = sshll.u32 (%p1357_p3), %s276_s12, 3 }
  0x1a   : > { %s278_s25 = scalar_lea.vmem (%p1357_p3), [#allocation4], %s1097_s14 }
  0x1b   : > { %s1010_s24 = scalar_lea.vmem (%p1357_p3), %s1500_s2, %s1098_s13 }
  0x1c   : > { %v1099_v4 = vld [vmem:[%s1010_s24 + $0x8] sm:$0xf] (%p1357_p3)  ;;  %v1100_v5 = vld [vmem:[%s1010_s24 + $0x14] sm:$0xf] (%p1357_p3) }
  0x1d   : > { %301 = vst [vmem:[%s278_s25] sm:$0xf] %v1099_v4  ;;  %303 = vst [vmem:[%s278_s25 + $0x4] sm:$0xf] %v1100_v5 }
  0x1e PF: > { %p1101_p5 = scmp.ge.s32.totalorder %s1295_s17, 1  ;;  %p336_p6 = scmp.lt.s32.totalorder %s1295_s17, 3 }
  0x20   : > { %p337_p7 = pnand %p1101_p5, %p336_p6 }
  0x21   : > { %s343_s23 = sand.u32 (!%p337_p7), 1, %s1287_s15   ;;  %p396_p8 = scmp.lt.s32.totalorder (!%p337_p7), %s1343_s18, 1 }
  0x22   : > { %340 = sbr.rel (%p337_p7) target bundleno = 1468 (0x5bc), region = 147  ;;  %s1387_s26 = sshll.u32 (!%p337_p7), %s343_s23, 3 }
  0x23   : > { %s352_s15 = scalar_lea.vmem (!%p337_p7), [#allocation3], %s1387_s26  ;;  %s345_s17 = scalar_lea.vmem (!%p337_p7), [#allocation2], %s1387_s26 }
  0x24   : > { %s1299_s5 = smov (!%p337_p7), 96   ;;  %s1300_s6 = smov (!%p337_p7), 32  }
  0x25   : > { %s359_s7 = scalar_lea.vmem (!%p337_p7), [#allocation4], %s1387_s26  ;;  %s1301_s8 = smov (!%p337_p7), 64  }
  0x26   : > { %s1105_s9 = sshll.u32 (!%p337_p7), %s1343_s18, 1 }
  0x27   : > { %v1297_v6 = vmov 0.0   ;;  %vm1298_vm0 = vmmov 0   ;;  %vm425_vm1 = vcmask 261120   ;;  %v1238_v7 = vld [vmem:[%s352_s15] sm:$0xff]   ;;  %v1239_v9 = vld [vmem:[%s345_s17] sm:$0xff]   ;;  %s397_s27 = scalar_select %p396_p8, %s1343_s18, 1  ;;  %v476_v10 = vlaneseq }
  0x28   : > { %1145 = vmatprep.subr.bf16.mxu0 %v1297_v6  ;;  %1147 = vmatprep.mubr.msk.bf16.mxu0 %vm1298_vm0, %v1297_v6  ;;  %v430_v8 = vsel %vm425_vm1, %v1238_v7, 0  ;;  %vm483_vm2 = vcmask 130048   ;;  %v1417_v37 = vld [vmem:[%s359_s7] sm:$0xff]   ;;  %p400_p9 = scmp.lt.s32.totalorder %s1105_s9, 3  ;;  %vm958_vm3 = vcmask 523264   ;;  %vm961_vm4 = vcmask 785408  }
  0x29   : > { %1151 = vmatprep.subr.bf16.mxu1 %v1297_v6  ;;  %1153 = vmatprep.mubr.msk.bf16.mxu1 %vm1298_vm0, %v1297_v6  ;;  %s398_s30 = scalar_lea.vmem %s1501_s3, %s397_s27  ;;  %v477_v13 = vshrl.u32 %v476_v10, 7 }
  0x2a   : > { %1146 = vmatpush3.bf16.xpose.msra.mxu0 %v430_v8  ;;  %v406_v11 = vld [vmem:[%s398_s30] sm:$0x1]  ;;  %1152 = vmatpush3.bf16.msra.mxu1 %v1417_v37  ;;  %s1508_s9 = smov (!%p400_p9, %s1105_s9), 3 }
  0x2b   : > { %1163 = vmatprep.subr.bf16.mxu0 %v1297_v6  ;;  %v407_v12 = vsub.f32 1.0, %v406_v11  ;;  %v478_v15 = vsub.s32 0, %v477_v13  ;;  %1157 = vmatprep.subr.bf16.mxu1 %v1297_v6  ;;  %s1106_s10 = sshll.u32 %s1508_s9, 2 }
  0x2c   : > { %s403_s12 = scalar_lea.vmem %s1502_s4, %s1106_s10 }
  0x2d   : > { %v408_v14 = vmul.f32 -1e+09, %v407_v12 }
  0x2f   : > { %v1406_v16 = vrot.slane %v408_v14, %v478_v15 }
  0x31   : > { %1148 = vmatmul.mubr.msk.bf16.vlgmr.msra.gmra.mxu0 %vm425_vm1, %v1239_v9 }
  0x32   : > { %1165 = vmatprep.mubr.msk.bf16.mxu0 %vm1298_vm0, %v1297_v6 }
  0xf1   : > { %v466_v17 = vpop.f32.mrf.mxu0 }
  0xf2   : > { %v473_v18 = vmul.f32 0.17677669, %v466_v17 }
  0xf3   : > { %v1149_v19 = vpop.f32.mrf.mxu0 }
  0xf4   : > { %v481_v20 = vadd.f32 %v1406_v16, %v473_v18 }
  0xf5   : > { %v469_v21 = vpop.f32.mrf.mxu0 }
  0xf6   : > { %v474_v22 = vmul.f32 0.17677669, %v469_v21  ;;  %v484_v23 = vsel %vm483_vm2, %v481_v20, -inf }
  0xf7   : > { %485 = vmax.xlane.f32.xlu0 %v484_v23  ;;  %v1150_v24 = vpop.f32.mrf.mxu0 }
  0xf8   : > { %v482_v25 = vadd.f32 %v1406_v16, %v474_v22 }
  0xfa   : > { %v487_v26 = vsel %vm483_vm2, %v482_v25, -inf }
  0xfb   : > { %488 = vmax.xlane.f32.xlu0 %v487_v26 }
 0x111   : > { %559 = vrot.lane.b32.xlu0 %v1238_v7, %s1299_s5 }
 0x115   : > { %809 = vrot.lane.b32.xlu0 %v1238_v7, %s1300_s6 }
 0x180   : > { %v486_v27 = vpop.xlane.xlu0 %485 }
 0x181   : > { %v490_v28 = vsub.f32 %v481_v20, %v486_v27 }
 0x183   : > { %v492_v29 = vmul.f32 1.442695, %v490_v28 }
 0x184   : > { %v489_v30 = vpop.xlane.xlu0 %488 }
 0x185   : > { %1241 = vpow2.f32 %v492_v29  ;;  %v491_v31 = vsub.f32 %v482_v25, %v489_v30 }
 0x187   : > { %v494_v32 = vmul.f32 1.442695, %v491_v31 }
 0x188   : > { %v560_v42 = vpop.permute.xlu0 %559 }
 0x189   : > { %1243 = vpow2.f32 %v494_v32  ;;  %v565_v46 = vsel %vm425_vm1, %v560_v42, 0 }
 0x18c   : > { %v810_v50 = vpop.permute.xlu0 %809 }
 0x18d   : > { %v815_v52 = vsel %vm425_vm1, %v810_v50, 0 }
 0x192   : > { %v1242_v33 = vpop.eup %1241 }
 0x193   : > { %v496_v34 = vsel %vm483_vm2, %v1242_v33, 0.0 }
 0x194   : > { %497 = vadd.xlane.f32.xlu1 %v496_v34 }
 0x196   : > { %v1244_v35 = vpop.eup %1243 }
 0x197   : > { %v499_v36 = vsel %vm483_vm2, %v1244_v35, 0.0 }
 0x198   : > { %500 = vadd.xlane.f32.xlu1 %v499_v36 }
 0x1a9   : > { %557 = vrot.lane.b32.xlu1 %v1239_v9, %s1299_s5 }
 0x1ad   : > { %684 = vrot.lane.b32.xlu1 %v1238_v7, %s1301_s8 }
 0x1b1   : > { %682 = vrot.lane.b32.xlu1 %v1239_v9, %s1301_s8 }
 0x1b5   : > { %807 = vrot.lane.b32.xlu1 %v1239_v9, %s1300_s6 }
 0x21d   : > { %v498_v38 = vpop.xlane.xlu1 %497 }
 0x21e   : > { %1245 = vrcp.f32 %v498_v38 }
 0x221   : > { %v501_v39 = vpop.xlane.xlu1 %500 }
 0x222   : > { %1247 = vrcp.f32 %v501_v39 }
 0x225   : > { %v558_v45 = vpop.permute.xlu1 %557 }
 0x229   : > { %v685_v48 = vpop.permute.xlu1 %684 }
 0x22a   : > { %v690_v49 = vsel %vm425_vm1, %v685_v48, 0 }
 0x22b   : > { %v1246_v40 = vpop.eup %1245 }
 0x22c   : > { %v504_v43 = vmul.f32 %v1246_v40, %v1242_v33 }
 0x22d   : > { %v683_v51 = vpop.permute.xlu1 %682 }
 0x22f   : > { %v1248_v41 = vpop.eup %1247 }
 0x230   : > { %v505_v44 = vmul.f32 %v1248_v41, %v1244_v35 }
 0x231   : > { %v808_v53 = vpop.permute.xlu1 %807 }
 0x232   : > { %v506_v47 = vpack.c.bf16 %v505_v44, %v504_v43 }
 0x234   : > { %1154 = vmatmul.mubr.msk.bf16.vlgmr.msra.gmra.mxu1 %vm483_vm2, %v506_v47 }
 0x235   : > { %1158 = vmatpush3.bf16.xpose.msra.mxu1 %v565_v46  ;;  %1159 = vmatprep.mubr.msk.bf16.mxu1 %vm1298_vm0, %v1297_v6 }
 0x236   : > { %1169 = vmatprep.subr.bf16.mxu1 %v1297_v6 }
 0x23c   : > { %1160 = vmatmul.mubr.msk.bf16.vlgmr.msra.gmra.mxu1 %vm425_vm1, %v558_v45 }
 0x23d   : > { %1170 = vmatpush3.bf16.xpose.msra.mxu1 %v690_v49  ;;  %1171 = vmatprep.mubr.msk.bf16.mxu1 %vm1298_vm0, %v1297_v6 }
 0x23e   : > { %1181 = vmatprep.subr.bf16.mxu1 %v1297_v6 }
 0x244   : > { %1172 = vmatmul.mubr.msk.bf16.vlgmr.msra.gmra.mxu1 %vm425_vm1, %v683_v51 }
 0x245   : > { %1182 = vmatpush3.bf16.xpose.msra.mxu1 %v815_v52  ;;  %1183 = vmatprep.mubr.msk.bf16.mxu1 %vm1298_vm0, %v1297_v6 }
 0x24c   : > { %1184 = vmatmul.mubr.msk.bf16.vlgmr.msra.gmra.mxu1 %vm425_vm1, %v808_v53 }
 0x2f4   : > { %v1440_v54 = vpop.f32.mrf.mxu1 }
 0x2f6   : > { %v1155_v55 = vpop.f32.mrf.mxu1 }
 0x2f8   : > { %v1442_v56 = vpop.f32.mrf.mxu1 }
 0x2fa   : > { %v1156_v57 = vpop.f32.mrf.mxu1 }
 0x2fc   : > { %v601_v58 = vpop.f32.mrf.mxu1 }
 0x2fd   : > { %v608_v59 = vmul.f32 0.17677669, %v601_v58 }
 0x2fe   : > { %v1161_v60 = vpop.f32.mrf.mxu1 }
 0x2ff   : > { %v610_v61 = vadd.f32 %v608_v59, %v1406_v16 }
 0x300   : > { %v604_v62 = vpop.f32.mrf.mxu1 }
 0x301   : > { %v609_v63 = vmul.f32 0.17677669, %v604_v62  ;;  %v612_v0 = vsel %vm483_vm2, %v610_v61, -inf }
 0x302   : > { %613 = vmax.xlane.f32.xlu0 %v612_v0  ;;  %v1162_v1 = vpop.f32.mrf.mxu1 }
 0x303   : > { %v611_v2 = vadd.f32 %v609_v63, %v1406_v16 }
 0x304   : > { %v726_v3 = vpop.f32.mrf.mxu1 }
 0x305   : > { %v733_v4 = vmul.f32 0.17677669, %v726_v3  ;;  %v615_v5 = vsel %vm483_vm2, %v611_v2, -inf }
 0x306   : > { %616 = vmax.xlane.f32.xlu1 %v615_v5  ;;  %v1173_v7 = vpop.f32.mrf.mxu1 }
 0x307   : > { %v735_v8 = vadd.f32 %v733_v4, %v1406_v16 }
 0x308   : > { %v729_v9 = vpop.f32.mrf.mxu1 }
 0x309   : > { %v734_v10 = vmul.f32 0.17677669, %v729_v9  ;;  %v737_v11 = vsel %vm483_vm2, %v735_v8, -inf }
 0x30a   : > { %738 = vmax.xlane.f32.xlu0 %v737_v11  ;;  %v1174_v12 = vpop.f32.mrf.mxu1 }
 0x30b   : > { %v736_v13 = vadd.f32 %v734_v10, %v1406_v16 }
 0x30c   : > { %v851_v14 = vpop.f32.mrf.mxu1 }
 0x30d   : > { %v858_v15 = vmul.f32 0.17677669, %v851_v14  ;;  %v740_v17 = vsel %vm483_vm2, %v736_v13, -inf }
 0x30e   : > { %741 = vmax.xlane.f32.xlu0 %v740_v17  ;;  %v1185_v18 = vpop.f32.mrf.mxu1 }
 0x30f   : > { %v860_v19 = vadd.f32 %v858_v15, %v1406_v16 }
 0x310   : > { %v854_v20 = vpop.f32.mrf.mxu1 }
 0x311   : > { %v859_v21 = vmul.f32 0.17677669, %v854_v20  ;;  %v862_v22 = vsel %vm483_vm2, %v860_v19, -inf }
 0x312   : > { %863 = vmax.xlane.f32.xlu0 %v862_v22  ;;  %v1186_v23 = vpop.f32.mrf.mxu1 }
 0x313   : > { %v861_v24 = vadd.f32 %v859_v21, %v1406_v16 }
 0x315   : > { %v865_v25 = vsel %vm483_vm2, %v861_v24, -inf }
 0x316   : > { %866 = vmax.xlane.f32.xlu1 %v865_v25 }
 0x38b   : > { %v614_v26 = vpop.xlane.xlu0 %613 }
 0x38c   : > { %v618_v27 = vsub.f32 %v610_v61, %v614_v26 }
 0x38e   : > { %v620_v28 = vmul.f32 1.442695, %v618_v27 }
 0x38f   : > { %v617_v29 = vpop.xlane.xlu1 %616 }
 0x390   : > { %1249 = vpow2.f32 %v620_v28  ;;  %v619_v30 = vsub.f32 %v611_v2, %v617_v29 }
 0x392   : > { %v622_v31 = vmul.f32 1.442695, %v619_v30 }
 0x393   : > { %v739_v32 = vpop.xlane.xlu0 %738 }
 0x394   : > { %1251 = vpow2.f32 %v622_v31  ;;  %v743_v33 = vsub.f32 %v735_v8, %v739_v32 }
 0x396   : > { %v745_v34 = vmul.f32 1.442695, %v743_v33 }
 0x397   : > { %v742_v35 = vpop.xlane.xlu0 %741 }
 0x398   : > { %1253 = vpow2.f32 %v745_v34  ;;  %v744_v36 = vsub.f32 %v736_v13, %v742_v35 }
 0x39a   : > { %v747_v38 = vmul.f32 1.442695, %v744_v36 }
 0x39b   : > { %v864_v39 = vpop.xlane.xlu0 %863 }
 0x39c   : > { %1255 = vpow2.f32 %v747_v38  ;;  %v868_v16 = vsub.f32 %v860_v19, %v864_v39 }
 0x39d   : > { %v1250_v40 = vpop.eup %1249 }
 0x39e   : > { %v870_v41 = vmul.f32 1.442695, %v868_v16  ;;  %v624_v42 = vsel %vm483_vm2, %v1250_v40, 0.0 }
 0x39f   : > { %625 = vadd.xlane.f32.xlu0 %v624_v42  ;;  %v867_v51 = vpop.xlane.xlu1 %866 }
 0x3a0   : > { %1257 = vpow2.f32 %v870_v41  ;;  %v869_v52 = vsub.f32 %v861_v24, %v867_v51 }
 0x3a1   : > { %v1252_v43 = vpop.eup %1251 }
 0x3a2   : > { %v627_v44 = vsel %vm483_vm2, %v1252_v43, 0.0  ;;  %v872_v53 = vmul.f32 1.442695, %v869_v52 }
 0x3a3   : > { %628 = vadd.xlane.f32.xlu1 %v627_v44 }
 0x3a4   : > { %1259 = vpow2.f32 %v872_v53 }
 0x3a5   : > { %v1254_v45 = vpop.eup %1253 }
 0x3a6   : > { %v749_v46 = vsel %vm483_vm2, %v1254_v45, 0.0 }
 0x3a7   : > { %750 = vadd.xlane.f32.xlu0 %v749_v46 }
 0x3a9   : > { %v1256_v47 = vpop.eup %1255 }
 0x3aa   : > { %v752_v48 = vsel %vm483_vm2, %v1256_v47, 0.0 }
 0x3ab   : > { %753 = vadd.xlane.f32.xlu1 %v752_v48 }
 0x3ad   : > { %v1258_v49 = vpop.eup %1257 }
 0x3ae   : > { %v874_v50 = vsel %vm483_vm2, %v1258_v49, 0.0 }
 0x3af   : > { %875 = vadd.xlane.f32.xlu0 %v874_v50 }
 0x3b1   : > { %v1260_v55 = vpop.eup %1259 }
 0x3b2   : > { %v877_v57 = vsel %vm483_vm2, %v1260_v55, 0.0 }
 0x3bc   : > { %760 = vrot.lane.b32.xlu1 %v1417_v37, %s1301_s8 }
 0x3c5   : > { %635 = vrot.lane.b32.xlu0 %v1417_v37, %s1299_s5 }
 0x3e0   : > { %878 = vadd.xlane.f32.xlu1 %v877_v57 }
 0x3f1   : > { %885 = vrot.lane.b32.xlu1 %v1417_v37, %s1300_s6 }
 0x428   : > { %v626_v58 = vpop.xlane.xlu0 %625 }
 0x429   : > { %1261 = vrcp.f32 %v626_v58 }
 0x42c   : > { %v629_v59 = vpop.xlane.xlu1 %628 }
 0x42d   : > { %1263 = vrcp.f32 %v629_v59 }
 0x430   : > { %v751_v60 = vpop.xlane.xlu0 %750 }
 0x431   : > { %1265 = vrcp.f32 %v751_v60 }
 0x434   : > { %v754_v61 = vpop.xlane.xlu1 %753 }
 0x435   : > { %1267 = vrcp.f32 %v754_v61 }
 0x436   : > { %v1262_v62 = vpop.eup %1261 }
 0x437   : > { %v632_v1 = vmul.f32 %v1262_v62, %v1250_v40 }
 0x438   : > { %v876_v63 = vpop.xlane.xlu0 %875  ;;  %v761_v37 = vpop.permute.xlu1 %760 }
 0x439   : > { %1269 = vrcp.f32 %v876_v63 }
 0x43a   : > { %v1264_v0 = vpop.eup %1263 }
 0x43b   : > { %v633_v2 = vmul.f32 %v1264_v0, %v1252_v43 }
 0x43c   : > { %v636_v3 = vpop.permute.xlu0 %635 }
 0x43d   : > { %1164 = vmatpush3.bf16.msra.mxu0 %v636_v3  ;;  %v634_v4 = vpack.c.bf16 %v633_v2, %v632_v1 }
 0x43e   : > { %1175 = vmatprep.subr.bf16.mxu0 %v1297_v6  ;;  %v1266_v5 = vpop.eup %1265 }
 0x43f   : > { %v757_v8 = vmul.f32 %v1266_v5, %v1254_v45 }
 0x440   : > { %1166 = vmatmul.mubr.msk.bf16.vlgmr.msra.gmra.mxu0 %vm483_vm2, %v634_v4 }
 0x441   : > { %1176 = vmatpush3.bf16.msra.mxu0 %v761_v37  ;;  %1177 = vmatprep.mubr.msk.bf16.mxu0 %vm1298_vm0, %v1297_v6 }
 0x442   : > { %v1268_v7 = vpop.eup %1267  ;;  %1187 = vmatprep.subr.bf16.mxu0 %v1297_v6 }
 0x443   : > { %v758_v9 = vmul.f32 %v1268_v7, %v1256_v47 }
 0x445   : > { %v759_v10 = vpack.c.bf16 %v758_v9, %v757_v8 }
 0x446   : > { %v1270_v13 = vpop.eup %1269 }
 0x447   : > { %v882_v15 = vmul.f32 %v1270_v13, %v1258_v49 }
 0x448   : > { %1178 = vmatmul.mubr.msk.bf16.vlgmr.msra.gmra.mxu0 %vm483_vm2, %v759_v10 }
 0x449   : > { %1189 = vmatprep.mubr.msk.bf16.mxu0 %vm1298_vm0, %v1297_v6 }
 0x469   : > { %v879_v11 = vpop.xlane.xlu1 %878 }
 0x46a   : > { %1271 = vrcp.f32 %v879_v11 }
 0x46d   : > { %v886_v12 = vpop.permute.xlu1 %885 }
 0x46e   : > { %1188 = vmatpush3.bf16.msra.mxu0 %v886_v12 }
 0x477   : > { %v1272_v14 = vpop.eup %1271 }
 0x478   : > { %v883_v17 = vmul.f32 %v1272_v14, %v1260_v55 }
 0x47a   : > { %v884_v18 = vpack.c.bf16 %v883_v17, %v882_v15 }
 0x47c   : > { %1190 = vmatmul.mubr.msk.bf16.vlgmr.msra.gmra.mxu0 %vm483_vm2, %v884_v18 }
 0x500   : > { %v675_v19 = vpop.f32.mrf.mxu0 }
 0x502   : > { %v1167_v20 = vpop.f32.mrf.mxu0 }
 0x504   : > { %v678_v21 = vpop.f32.mrf.mxu0 }
 0x505   : > { %v1223_v22 = vpack.i.bf16 %v678_v21, %v675_v19 }
 0x506   : > { %v1168_v23 = vpop.f32.mrf.mxu0 }
 0x507   : > { %1224 = vrot.lane.b32.xlu1 %v1223_v22, %s1300_s6 }
 0x508   : > { %v800_v6 = vpop.f32.mrf.mxu0 }
 0x50a   : > { %v1179_v24 = vpop.f32.mrf.mxu0 }
 0x50c   : > { %v803_v25 = vpop.f32.mrf.mxu0 }
 0x50d   : > { %v1228_v26 = vpack.i.bf16 %v803_v25, %v800_v6 }
 0x50e   : > { %v1180_v27 = vpop.f32.mrf.mxu0 }
 0x50f   : > { %1229 = vrot.lane.b32.xlu0 %v1228_v26, %s1301_s8 }
 0x53c   : > { %v925_v28 = vpop.f32.mrf.mxu0 }
 0x53e   : > { %v1191_v29 = vpop.f32.mrf.mxu0 }
 0x540   : > { %v928_v30 = vpop.f32.mrf.mxu0 }
 0x541   : > { %v1233_v31 = vpack.i.bf16 %v928_v30, %v925_v28 }
 0x542   : > { %v1192_v32 = vpop.f32.mrf.mxu0 }
 0x543   : > { %1234 = vrot.lane.b32.xlu1 %v1233_v31, %s1299_s5 }
 0x579   : > { %v1225_v33 = vpop.permute.xlu1 %1224 }
 0x57a   : > { %v1227_v35 = vunpack.i.h.bf16 %v1225_v33  ;;  %v1226_v36 = vunpack.i.l.bf16 %v1225_v33 }
 0x57c   : > { %v957_v40 = vsel %vm425_vm1, %v1442_v56, %v1227_v35  ;;  %v956_v41 = vsel %vm425_vm1, %v1440_v54, %v1226_v36 }
 0x581   : > { %v1230_v34 = vpop.permute.xlu0 %1229 }
 0x582   : > { %v1232_v38 = vunpack.i.h.bf16 %v1230_v34  ;;  %v1231_v39 = vunpack.i.l.bf16 %v1230_v34 }
 0x584   : > { %v960_v44 = vsel %vm958_vm3, %v957_v40, %v1232_v38  ;;  %v959_v45 = vsel %vm958_vm3, %v956_v41, %v1231_v39 }
 0x5b5   : > { %v1235_v16 = vpop.permute.xlu1 %1234 }
 0x5b6   : > { %v1237_v42 = vunpack.i.h.bf16 %v1235_v16  ;;  %v1236_v43 = vunpack.i.l.bf16 %v1235_v16 }
 0x5b8   : > { %v963_v46 = vsel %vm961_vm4, %v960_v44, %v1237_v42  ;;  %v962_v47 = vsel %vm961_vm4, %v959_v45, %v1236_v43 }
 0x5b9   : > { %v1127_v48 = vpack.c.bf16 %v963_v46, %v962_v47 }
 0x5bb   : > { %1128 = vst [vmem:[%s403_s12] sm:$0xff] %v1127_v48  }
 0x5bc PF: > { %p11_p10 = scmp.ge.s32.totalorder %s1346_s19, 4   ;;  %s1504_s15 = smov %s1291_s16 }
 0x5bd   : > { %s1505_s16 = smov %s1355_s22  ;;  %s1506_s17 = smov %s1346_s19 }
 0x5be   :  { %13 = sbr.rel (!%p11_p10) target bundleno = 2 (0x2), region = 213 }

// kernel: bert_for_sts.23
= control target key start
LH: loop header
LB: loop body
LE: loop exit
PB: predicated region body
PF: predicated region fallthrough
CT: control target
= control target key end

     0   :  { %vm62_vm0 = vcmask 7168   ;;  %v156_v3 = vmov 0   ;;  %s194_s0 = inlined_call_operand.vmem [shape: bf16[2,16,128], index: 0, kind: input, shape index: {}]   ;;  %s195_s1 = inlined_call_operand.vmem [shape: f32[2,16,1], index: 1, kind: input, shape index: {}]   ;;  %s196_s2 = inlined_call_operand.hbm [shape: f32[2,128], index: 2, kind: output, shape index: {}]  }
   0x1   :  { %v22_v0 = vld [vmem:[%s195_s1 + $0x10] sm:$0xff]  ;;  %v20_v1 = vld [vmem:[%s195_s1] sm:$0xff]  ;;  %v23_v2 = vld [vmem:[%s195_s1 + $0x18] sm:$0xff]  ;;  %129 = vset.pattern.permute.xlu1 %v156_v3  ;;  %128 = vset.pattern.permute.xlu0 %v156_v3 }
   0x2   :  { %v72_v4 = vsel %vm62_vm0, %v22_v0, 0.0  ;;  %v63_v5 = vsel %vm62_vm0, %v20_v1, 0.0  ;;  %v73_v6 = vsel %vm62_vm0, %v23_v2, 0.0  ;;  %v21_v7 = vld [vmem:[%s195_s1 + $0x8] sm:$0xff]  ;;  %36 = vperm.xlu1 %129, %v22_v0   ;;  %26 = vperm.xlu0 %128, %v20_v1  }
   0x3   :  { %v74_v8 = vadd.f32 %v73_v6, %v72_v4  ;;  %v64_v9 = vsel %vm62_vm0, %v21_v7, 0.0 }
   0x4   :  { %7 = vsyncpa [#allocation3], 0  ;;  %v65_v10 = vadd.f32 %v64_v9, %v63_v5  ;;  %v125_v25 = vld [vmem:[%s194_s0 + $0x8] sm:$0xff]   ;;  %v118_v26 = vld [vmem:[%s194_s0] sm:$0xff]   ;;  %s157_s0 = smov [#allocation2]   ;;  %vm99_vm1 = vcmask 1041409  }
   0x5   :  { %v75_v11 = vrot.slane %v74_v8, 4  ;;  %v123_v27 = vunpack.c.l.bf16 %v125_v25  ;;  %v119_v28 = vunpack.c.l.bf16 %v118_v26  ;;  %v124_v31 = vunpack.c.h.bf16 %v125_v25  ;;  %s109_s20 = sshll.u32 %s157_s0, 4  ;;  %s110_s20 = int_to_ptr.vmem [resolvable:$true] %s109_s20 }
   0x6   :  { %v66_v12 = vrot.slane %v65_v10, 4  ;;  %41 = vperm.xlu1 %129, %v23_v2   ;;  %31 = vperm.xlu0 %128, %v21_v7   ;;  %v120_v32 = vunpack.c.h.bf16 %v118_v26  ;;  %s134_s21 = scalar_lea.vmem %s110_s20, 32  ;;  %p139_p1 = scmp.lt.s32.totalorder %s110_s20, %s110_s20 }
   0x7   :  { %v76_v13 = vadd.f32 %v75_v11, %v74_v8  ;;  %p135_p0 = scmp.ne.s32.totalorder %s110_s20, %s134_s21  ;;  %p140_p2 = scmp.lt.s32.totalorder %s134_s21, %s134_s21 }
   0x8   :  { %v67_v14 = vadd.f32 %v66_v12, %v65_v10 }
   0x9   :  { %v77_v15 = vrot.slane %v76_v13, 2  ;;  %p141_p3 = por %p140_p2, %p139_p1 }
   0xa   :  { %v68_v16 = vrot.slane %v67_v14, 2 }
   0xb   :  { %v78_v17 = vadd.f32 %v77_v15, %v76_v13  ;;  %p142_p4 = pnand %p141_p3, %p135_p0 }
   0xc   :  { %v69_v18 = vadd.f32 %v68_v16, %v67_v14 }
   0xd   :  { %v79_v19 = vrot.slane %v78_v17, 1 }
   0xe   :  { %v70_v20 = vrot.slane %v69_v18, 1 }
   0xf   :  { %v80_v21 = vadd.f32 %v79_v19, %v78_v17 }
  0x10   :  { %v71_v22 = vadd.f32 %v70_v20, %v69_v18 }
  0x11   :  { %v82_v23 = vmax.f32 %v80_v21, 1e-09 }
  0x12   :  { %v81_v24 = vmax.f32 %v71_v22, 1e-09 }
  0x13   :  { %90 = vperm.xlu1 %129, %v82_v23  }
  0x14   :  { %85 = vperm.xlu0 %128, %v81_v24  }
  0x7d   :  { %v37_v29 = vpop.permute.xlu1 %36  ;;  %v27_v30 = vpop.permute.xlu0 %26 }
  0x7e   :  { %v46_v33 = vmul.f32 %v123_v27, %v37_v29  ;;  %v44_v34 = vmul.f32 %v119_v28, %v27_v30 }
  0x81   :  { %v42_v35 = vpop.permute.xlu1 %41  ;;  %v32_v36 = vpop.permute.xlu0 %31 }
  0x82   :  { %v47_v37 = vmul.f32 %v124_v31, %v42_v35  ;;  %v45_v38 = vmul.f32 %v120_v32, %v32_v36 }
  0x84   :  { %v55_v39 = vadd.f32 %v47_v37, %v46_v33  ;;  %v48_v40 = vadd.f32 %v45_v38, %v44_v34 }
  0x86   :  { %v56_v41 = vrot.slane %v55_v39, 4  ;;  %v49_v42 = vrot.slane %v48_v40, 4 }
  0x88   :  { %v57_v43 = vadd.f32 %v56_v41, %v55_v39  ;;  %v50_v44 = vadd.f32 %v49_v42, %v48_v40 }
  0x8a   :  { %v58_v46 = vrot.slane %v57_v43, 2  ;;  %v51_v48 = vrot.slane %v50_v44, 2 }
  0x8c   :  { %v59_v49 = vadd.f32 %v58_v46, %v57_v43  ;;  %v52_v50 = vadd.f32 %v51_v48, %v50_v44 }
  0x8e   :  { %v91_v45 = vpop.permute.xlu1 %90  ;;  %v60_v51 = vrot.slane %v59_v49, 1  ;;  %v53_v52 = vrot.slane %v52_v50, 1 }
  0x8f   :  { %130 = vrcp.f32 %v91_v45  ;;  %v86_v47 = vpop.permute.xlu0 %85 }
  0x90   :  { %132 = vrcp.f32 %v86_v47  ;;  %v61_v53 = vadd.f32 %v60_v51, %v59_v49  ;;  %v54_v55 = vadd.f32 %v53_v52, %v52_v50 }
  0x9c   :  { %v131_v54 = vpop.eup %130 }
  0x9d   :  { %v133_v56 = vpop.eup %132  ;;  %v96_v57 = vmul.f32 %v131_v54, %v61_v53 }
  0x9e   :  { %v94_v58 = vmul.f32 %v133_v56, %v54_v55 }
  0xa0   :  { %v100_v59 = vsel %vm99_vm1, %v96_v57, %v94_v58 }
  0xa1   :  { %102 = vst [vmem:[#allocation2] sm:$0x3] %v100_v59 }
  0xa2   :  { %145 = shalt.err (!%p142_p4)
}
  0xa3   :  { %112 = dma.vmem_to_hbm [thread:$0]  %s110_s20, 32, %s196_s2, [#allocation3]  }
  0xa4   :  { %154 = dma.done.wait [#allocation3], 32  }
  0xa5   :  { %155 = vsyncadd [#allocation3], 4294967264 }
  0xa6   :  { %116 = vsyncpa [#allocation3], 1 }

// kernel: bert_for_sts.17
= control target key start
LH: loop header
LB: loop body
LE: loop exit
PB: predicated region body
PF: predicated region fallthrough
CT: control target
= control target key end

     0   :  { %s891_s1 = inlined_call_operand.vmem [shape: bf16[512,128], index: 1, kind: input, shape index: {}]   ;;  %s892_s0 = inlined_call_operand.vmem [shape: bf16[32,512], index: 0, kind: input, shape index: {}]   ;;  %s893_s2 = inlined_call_operand.vmem [shape: f32[1,128], index: 2, kind: input, shape index: {}]   ;;  %s894_s3 = inlined_call_operand.vmem [shape: bf16[32,128], index: 3, kind: input, shape index: {}]   ;;  %s895_s4 = inlined_call_operand.vmem [shape: f32[1,128], index: 4, kind: input, shape index: {}]   ;;  %s896_s5 = inlined_call_operand.vmem [shape: f32[1,128], index: 5, kind: input, shape index: {}]   ;;  %s897_s6 = inlined_call_operand.vmem [shape: bf16[32,128], index: 6, kind: output, shape index: {}]  }
   0x1   :  { %v663_v0 = vld [vmem:[%s891_s1 + $0x78] sm:$0xff]   ;;  %v667_v4 = vld [vmem:[%s891_s1 + $0x70] sm:$0xff]   ;;  %v671_v8 = vld [vmem:[%s891_s1 + $0x68] sm:$0xff]  }
   0x2   :  { %v664_v1 = vld [vmem:[%s891_s1 + $0xf8] sm:$0xff]   ;;  %607 = vmatprep.subr.bf16.mxu0 %v663_v0  ;;  %v668_v5 = vld [vmem:[%s891_s1 + $0xf0] sm:$0xff]   ;;  %v672_v9 = vld [vmem:[%s891_s1 + $0xe8] sm:$0xff]  }
   0x3   :  { %v665_v2 = vld [vmem:[%s891_s1 + $0x38] sm:$0xff]   ;;  %635 = vmatprep.subr.bf16.mxu1 %v664_v1  ;;  %v669_v6 = vld [vmem:[%s891_s1 + $0x30] sm:$0xff]   ;;  %v673_v10 = vld [vmem:[%s891_s1 + $0x28] sm:$0xff]  }
   0x4   :  { %v666_v3 = vld [vmem:[%s891_s1 + $0xb8] sm:$0xff]   ;;  %608 = vmatpush3.bf16.msra.mxu0 %v665_v2  ;;  %v670_v7 = vld [vmem:[%s891_s1 + $0xb0] sm:$0xff]   ;;  %v674_v11 = vld [vmem:[%s891_s1 + $0xa8] sm:$0xff]  }
   0x5   :  { %636 = vmatpush3.bf16.msra.mxu1 %v666_v3  ;;  %609 = vmatprep.subr.bf16.mxu0 %v667_v4  ;;  %v675_v12 = vld [vmem:[%s891_s1 + $0x60] sm:$0xff]   ;;  %v679_v16 = vld [vmem:[%s891_s1 + $0x58] sm:$0xff]   ;;  %v683_v20 = vld [vmem:[%s891_s1 + $0x50] sm:$0xff]  }
   0x6   :  { %637 = vmatprep.subr.bf16.mxu1 %v668_v5  ;;  %v676_v13 = vld [vmem:[%s891_s1 + $0xe0] sm:$0xff]   ;;  %v680_v17 = vld [vmem:[%s891_s1 + $0xd8] sm:$0xff]   ;;  %v684_v21 = vld [vmem:[%s891_s1 + $0xd0] sm:$0xff]  }
   0x7   :  { %v677_v14 = vld [vmem:[%s891_s1 + $0x20] sm:$0xff]   ;;  %v681_v18 = vld [vmem:[%s891_s1 + $0x18] sm:$0xff]   ;;  %v685_v22 = vld [vmem:[%s891_s1 + $0x10] sm:$0xff]  }
   0x8   :  { %610 = vmatpush3.bf16.msra.mxu0 %v669_v6  ;;  %v678_v15 = vld [vmem:[%s891_s1 + $0xa0] sm:$0xff]   ;;  %v682_v19 = vld [vmem:[%s891_s1 + $0x98] sm:$0xff]   ;;  %v686_v23 = vld [vmem:[%s891_s1 + $0x90] sm:$0xff]  }
   0x9   :  { %638 = vmatpush3.bf16.msra.mxu1 %v670_v7  ;;  %611 = vmatprep.subr.bf16.mxu0 %v671_v8  ;;  %v687_v24 = vld [vmem:[%s891_s1 + $0x48] sm:$0xff]   ;;  %v691_v28 = vld [vmem:[%s891_s1 + $0x40] sm:$0xff]  }
   0xa   :  { %639 = vmatprep.subr.bf16.mxu1 %v672_v9  ;;  %v688_v25 = vld [vmem:[%s891_s1 + $0xc8] sm:$0xff]   ;;  %v692_v29 = vld [vmem:[%s891_s1 + $0xc0] sm:$0xff]  }
   0xb   :  { %v689_v26 = vld [vmem:[%s891_s1 + $0x8] sm:$0xff]   ;;  %v693_v30 = vld [vmem:[%s891_s1] sm:$0xff]  }
   0xc   :  { %612 = vmatpush3.bf16.msra.mxu0 %v673_v10  ;;  %v690_v27 = vld [vmem:[%s891_s1 + $0x88] sm:$0xff]   ;;  %v694_v31 = vld [vmem:[%s891_s1 + $0x80] sm:$0xff]  }
   0xd   :  { %640 = vmatpush3.bf16.msra.mxu1 %v674_v11  ;;  %613 = vmatprep.subr.bf16.mxu0 %v675_v12  ;;  %v695_v32 = vld [vmem:[%s892_s0] ss:$16 sps:$4 sm:$0xff]   ;;  %v697_v33 = vld [vmem:[%s892_s0 + $0x4] ss:$16 sps:$4 sm:$0xff]   ;;  %v698_v34 = vld [vmem:[%s892_s0 + $0x8] ss:$16 sps:$4 sm:$0xff]  }
   0xe   :  { %641 = vmatprep.subr.bf16.mxu1 %v676_v13  ;;  %v700_v35 = vld [vmem:[%s892_s0 + $0xc] ss:$16 sps:$4 sm:$0xff]   ;;  %367 = vmatprep.mubr.bf16.mxu0 %v697_v33  ;;  %v701_v36 = vld [vmem:[%s892_s0 + $0x24] ss:$16 sps:$4 sm:$0xff]   ;;  %v705_v38 = vld [vmem:[%s892_s0 + $0x20] ss:$16 sps:$4 sm:$0xff]  }
   0xf   :  { %416 = vmatprep.mubr.bf16.mxu1 %v700_v35  ;;  %v703_v37 = vld [vmem:[%s892_s0 + $0x2c] ss:$16 sps:$4 sm:$0xff]   ;;  %v706_v39 = vld [vmem:[%s892_s0 + $0x28] ss:$16 sps:$4 sm:$0xff]   ;;  %v536_v42 = vld [vmem:[%s893_s2] ss:$0 sm:$0xff] }
  0x10   :  { %614 = vmatpush3.bf16.msra.mxu0 %v677_v14  ;;  %v588_v44 = vld [vmem:[%s894_s3] sm:$0xff]   ;;  %v605_v63 = vld [vmem:[%s894_s3 + $0x8] sm:$0xff]  }
  0x11   :  { %642 = vmatpush3.bf16.msra.mxu1 %v678_v15  ;;  %615 = vmatprep.subr.bf16.mxu0 %v679_v16  ;;  %v589_v51 = vunpack.c.l.bf16 %v588_v44  ;;  %v590_v61 = vunpack.c.h.bf16 %v588_v44  ;;  %v593_v8 = vunpack.c.l.bf16 %v605_v63  ;;  %v594_v16 = vunpack.c.h.bf16 %v605_v63 }
  0x12   :  { %643 = vmatprep.subr.bf16.mxu1 %v680_v17 }
  0x14   :  { %616 = vmatpush3.bf16.msra.mxu0 %v681_v18 }
  0x15   :  { %644 = vmatpush3.bf16.msra.mxu1 %v682_v19  ;;  %617 = vmatprep.subr.bf16.mxu0 %v683_v20 }
  0x16   :  { %645 = vmatprep.subr.bf16.mxu1 %v684_v21 }
  0x18   :  { %618 = vmatpush3.bf16.msra.mxu0 %v685_v22 }
  0x19   :  { %646 = vmatpush3.bf16.msra.mxu1 %v686_v23  ;;  %619 = vmatprep.subr.bf16.mxu0 %v687_v24 }
  0x1a   :  { %647 = vmatprep.subr.bf16.mxu1 %v688_v25 }
  0x1c   :  { %620 = vmatpush3.bf16.msra.mxu0 %v689_v26 }
  0x1d   :  { %648 = vmatpush3.bf16.msra.mxu1 %v690_v27  ;;  %621 = vmatprep.subr.bf16.mxu0 %v691_v28 }
  0x1e   :  { %649 = vmatprep.subr.bf16.mxu1 %v692_v29 }
  0x20   :  { %622 = vmatpush3.bf16.msra.mxu0 %v693_v30 }
  0x21   :  { %650 = vmatpush3.bf16.msra.mxu1 %v694_v31 }
  0x23   :  { %368 = vmatmul.mubr.bf16.vlgmr.msra.gmra.mxu0 %v695_v32 }
  0x24   :  { %417 = vmatmul.mubr.bf16.vlgmr.msra.gmra.mxu1 %v698_v34  ;;  %375 = vmatprep.mubr.bf16.mxu0 %v701_v36 }
  0x25   :  { %424 = vmatprep.mubr.bf16.mxu1 %v703_v37 }
  0x2b   :  { %376 = vmatmul.mubr.bf16.gmra.mxu0 %v705_v38 }
  0x2c   :  { %425 = vmatmul.mubr.bf16.gmra.mxu1 %v706_v39 }
  0xe3   :  { %v623_v40 = vpop.f32.mrf.mxu0 }
  0xe4   :  { %v651_v41 = vpop.f32.mrf.mxu1 }
  0xe5   :  { %v624_v43 = vpop.f32.mrf.mxu0 }
  0xe6   :  { %v625_v45 = vadd.f32 %v624_v43, %v623_v40  ;;  %v652_v46 = vpop.f32.mrf.mxu1 }
  0xe7   :  { %v626_v47 = vpop.f32.mrf.mxu0  ;;  %v653_v49 = vadd.f32 %v652_v46, %v651_v41 }
  0xe8   :  { %v370_v48 = vadd.f32 %v625_v45, %v536_v42  ;;  %v654_v50 = vpop.f32.mrf.mxu1 }
  0xe9   :  { %v627_v52 = vpop.f32.mrf.mxu0 }
  0xea   :  { %v419_v53 = vadd.f32 %v653_v49, %v370_v48  ;;  %v628_v54 = vadd.f32 %v627_v52, %v626_v47  ;;  %v655_v55 = vpop.f32.mrf.mxu1  ;;  %v577_v49 = vld [vmem:[%s895_s4] ss:$0 sm:$0xff] }
  0xeb   :  { %v629_v56 = vpop.f32.mrf.mxu0  ;;  %v656_v58 = vadd.f32 %v655_v55, %v654_v50 }
  0xec   :  { %v373_v57 = vadd.f32 %v628_v54, %v536_v42  ;;  %v657_v59 = vpop.f32.mrf.mxu1  ;;  %v441_v60 = vadd.f32 %v589_v51, %v419_v53  ;;  %v578_v53 = vld [vmem:[%s896_s5] ss:$0 sm:$0xff] }
  0xed   :  { %v630_v62 = vpop.f32.mrf.mxu0 }
  0xee   :  { %v422_v0 = vadd.f32 %v656_v58, %v373_v57  ;;  %v631_v1 = vadd.f32 %v630_v62, %v629_v56  ;;  %v658_v2 = vpop.f32.mrf.mxu1  ;;  %445 = vadd.xlane.f32.xlu0 %v441_v60 }
  0xef   :  { %v632_v3 = vpop.f32.mrf.mxu0  ;;  %v659_v5 = vadd.f32 %v658_v2, %v657_v59 }
  0xf0   :  { %v378_v4 = vadd.f32 %v631_v1, %v536_v42  ;;  %v660_v6 = vpop.f32.mrf.mxu1  ;;  %v442_v7 = vadd.f32 %v590_v61, %v422_v0 }
  0xf1   :  { %v633_v9 = vpop.f32.mrf.mxu0 }
  0xf2   :  { %v427_v10 = vadd.f32 %v659_v5, %v378_v4  ;;  %v634_v11 = vadd.f32 %v633_v9, %v632_v3  ;;  %v661_v12 = vpop.f32.mrf.mxu1  ;;  %447 = vadd.xlane.f32.xlu0 %v442_v7 }
  0xf3   :  { %v662_v14 = vadd.f32 %v661_v12, %v660_v6 }
  0xf4   :  { %v381_v13 = vadd.f32 %v634_v11, %v536_v42  ;;  %v443_v15 = vadd.f32 %v593_v8, %v427_v10 }
  0xf6   :  { %v430_v17 = vadd.f32 %v662_v14, %v381_v13  ;;  %449 = vadd.xlane.f32.xlu1 %v443_v15 }
  0xf8   :  { %v444_v18 = vadd.f32 %v594_v16, %v430_v17 }
  0xfa   :  { %451 = vadd.xlane.f32.xlu1 %v444_v18 }
 0x177   :  { %v446_v19 = vpop.xlane.xlu0 %445 }
 0x178   :  { %v454_v20 = vmul.f32 0.0078125, %v446_v19 }
 0x17a   :  { %v458_v21 = vsub.f32 %v441_v60, %v454_v20 }
 0x17b   :  { %v448_v22 = vpop.xlane.xlu0 %447 }
 0x17c   :  { %v455_v23 = vmul.f32 0.0078125, %v448_v22  ;;  %v462_v24 = vmul.f32 %v458_v21, %v458_v21 }
 0x17e   :  { %v459_v25 = vsub.f32 %v442_v7, %v455_v23  ;;  %466 = vadd.xlane.f32.xlu0 %v462_v24 }
 0x17f   :  { %v450_v26 = vpop.xlane.xlu1 %449 }
 0x180   :  { %v456_v27 = vmul.f32 0.0078125, %v450_v26  ;;  %v463_v28 = vmul.f32 %v459_v25, %v459_v25 }
 0x182   :  { %v460_v29 = vsub.f32 %v443_v15, %v456_v27  ;;  %468 = vadd.xlane.f32.xlu1 %v463_v28 }
 0x183   :  { %v452_v30 = vpop.xlane.xlu1 %451 }
 0x184   :  { %v457_v31 = vmul.f32 0.0078125, %v452_v30  ;;  %v464_v32 = vmul.f32 %v460_v29, %v460_v29 }
 0x186   :  { %v461_v33 = vsub.f32 %v444_v18, %v457_v31  ;;  %470 = vadd.xlane.f32.xlu0 %v464_v32 }
 0x188   :  { %v465_v34 = vmul.f32 %v461_v33, %v461_v33 }
 0x18a   :  { %472 = vadd.xlane.f32.xlu1 %v465_v34 }
 0x207   :  { %v467_v35 = vpop.xlane.xlu0 %466 }
 0x208   :  { %v474_v36 = vmul.f32 0.0078125, %v467_v35 }
 0x20a   :  { %v478_v37 = vadd.f32 1e-12, %v474_v36 }
 0x20b   :  { %v469_v38 = vpop.xlane.xlu1 %468 }
 0x20c   :  { %707 = vrsqrt.f32 %v478_v37  ;;  %v475_v39 = vmul.f32 0.0078125, %v469_v38 }
 0x20e   :  { %v479_v40 = vadd.f32 1e-12, %v475_v39 }
 0x20f   :  { %v471_v41 = vpop.xlane.xlu0 %470 }
 0x210   :  { %709 = vrsqrt.f32 %v479_v40  ;;  %v476_v42 = vmul.f32 0.0078125, %v471_v41 }
 0x212   :  { %v480_v43 = vadd.f32 1e-12, %v476_v42 }
 0x213   :  { %v473_v44 = vpop.xlane.xlu1 %472 }
 0x214   :  { %711 = vrsqrt.f32 %v480_v43  ;;  %v477_v45 = vmul.f32 0.0078125, %v473_v44 }
 0x216   :  { %v481_v46 = vadd.f32 1e-12, %v477_v45 }
 0x218   :  { %713 = vrsqrt.f32 %v481_v46 }
 0x219   :  { %v708_v47 = vpop.eup %707 }
 0x21a   :  { %v486_v48 = vmul.f32 %v708_v47, %v458_v21 }
 0x21c   :  { %v497_v51 = vmul.f32 %v577_v49, %v486_v48 }
 0x21d   :  { %v710_v50 = vpop.eup %709 }
 0x21e   :  { %v487_v52 = vmul.f32 %v710_v50, %v459_v25  ;;  %v508_v56 = vadd.f32 %v578_v53, %v497_v51 }
 0x220   :  { %v498_v54 = vmul.f32 %v577_v49, %v487_v52 }
 0x221   :  { %v712_v55 = vpop.eup %711 }
 0x222   :  { %v509_v57 = vadd.f32 %v578_v53, %v498_v54  ;;  %v488_v58 = vmul.f32 %v712_v55, %v460_v29 }
 0x224   :  { %v598_v59 = vpack.c.bf16 %v509_v57, %v508_v56  ;;  %v499_v61 = vmul.f32 %v577_v49, %v488_v58 }
 0x225   :  { %v714_v60 = vpop.eup %713 }
 0x226   :  { %599 = vst [vmem:[%s897_s6] sm:$0xff] %v598_v59   ;;  %v489_v62 = vmul.f32 %v714_v60, %v461_v33  ;;  %v510_v0 = vadd.f32 %v578_v53, %v499_v61 }
 0x228   :  { %v500_v63 = vmul.f32 %v577_v49, %v489_v62 }
 0x22a   :  { %v511_v1 = vadd.f32 %v578_v53, %v500_v63 }
 0x22c   :  { %v603_v2 = vpack.c.bf16 %v511_v1, %v510_v0 }
 0x22e   :  { %606 = vst [vmem:[%s897_s6 + $0x8] sm:$0xff] %v603_v2  }

// kernel: bert_for_sts.16
= control target key start
LH: loop header
LB: loop body
LE: loop exit
PB: predicated region body
PF: predicated region fallthrough
CT: control target
= control target key end

     0   :  { %v688_v1 = vmov 0   ;;  %v53_v35 = vlaneseq  ;;  %s978_s1 = inlined_call_operand.vmem [shape: bf16[128,512], index: 1, kind: input, shape index: {}]   ;;  %s979_s0 = inlined_call_operand.vmem [shape: bf16[32,128], index: 0, kind: input, shape index: {}]   ;;  %s980_s2 = inlined_call_operand.vmem [shape: f32[1,512], index: 2, kind: input, shape index: {}]   ;;  %s981_s3 = inlined_call_operand.vmem [shape: bf16[32,512], index: 3, kind: output, shape index: {}]  }
   0x1   :  { %v606_v0 = vld [vmem:[%s978_s1 + $0xe4] ss:$16 sps:$4 sm:$0xff]   ;;  %277 = vmatprep.mubr.bf16.mxu0 %v688_v1  ;;  %330 = vmatprep.mubr.bf16.mxu1 %v688_v1  ;;  %v608_v2 = vld [vmem:[%s978_s1 + $0xec] ss:$16 sps:$4 sm:$0xff]   ;;  %v610_v3 = vld [vmem:[%s978_s1 + $0xe0] ss:$16 sps:$4 sm:$0xff]  }
   0x2   :  { %245 = vmatprep.subr.bf16.mxu0 %v606_v0  ;;  %v611_v4 = vld [vmem:[%s978_s1 + $0xe8] ss:$16 sps:$4 sm:$0xff]   ;;  %298 = vmatprep.subr.bf16.mxu1 %v608_v2  ;;  %v612_v5 = vld [vmem:[%s978_s1 + $0xc4] ss:$16 sps:$4 sm:$0xff]   ;;  %v614_v6 = vld [vmem:[%s978_s1 + $0xcc] ss:$16 sps:$4 sm:$0xff]  }
   0x3   :  { %246 = vmatpush1.bf16.msra.mxu0 %v610_v3  ;;  %299 = vmatpush1.bf16.msra.mxu1 %v611_v4  ;;  %v616_v7 = vld [vmem:[%s978_s1 + $0xc0] ss:$16 sps:$4 sm:$0xff]   ;;  %v617_v8 = vld [vmem:[%s978_s1 + $0xc8] ss:$16 sps:$4 sm:$0xff]   ;;  %v618_v9 = vld [vmem:[%s978_s1 + $0xa4] ss:$16 sps:$4 sm:$0xff]  }
   0x4   :  { %247 = vmatprep.subr.bf16.mxu0 %v612_v5  ;;  %300 = vmatprep.subr.bf16.mxu1 %v614_v6  ;;  %v620_v10 = vld [vmem:[%s978_s1 + $0xac] ss:$16 sps:$4 sm:$0xff]   ;;  %v622_v11 = vld [vmem:[%s978_s1 + $0xa0] ss:$16 sps:$4 sm:$0xff]   ;;  %v623_v12 = vld [vmem:[%s978_s1 + $0xa8] ss:$16 sps:$4 sm:$0xff]  }
   0x5   :  { %v624_v13 = vld [vmem:[%s978_s1 + $0x84] ss:$16 sps:$4 sm:$0xff]   ;;  %v626_v14 = vld [vmem:[%s978_s1 + $0x8c] ss:$16 sps:$4 sm:$0xff]   ;;  %v628_v15 = vld [vmem:[%s978_s1 + $0x80] ss:$16 sps:$4 sm:$0xff]  }
   0x6   :  { %v629_v16 = vld [vmem:[%s978_s1 + $0x88] ss:$16 sps:$4 sm:$0xff]   ;;  %v630_v17 = vld [vmem:[%s978_s1 + $0x64] ss:$16 sps:$4 sm:$0xff]   ;;  %v632_v18 = vld [vmem:[%s978_s1 + $0x6c] ss:$16 sps:$4 sm:$0xff]  }
   0x7   :  { %248 = vmatpush1.bf16.msra.mxu0 %v616_v7  ;;  %301 = vmatpush1.bf16.msra.mxu1 %v617_v8  ;;  %v634_v19 = vld [vmem:[%s978_s1 + $0x60] ss:$16 sps:$4 sm:$0xff]   ;;  %v635_v20 = vld [vmem:[%s978_s1 + $0x68] ss:$16 sps:$4 sm:$0xff]   ;;  %v636_v21 = vld [vmem:[%s978_s1 + $0x44] ss:$16 sps:$4 sm:$0xff]  }
   0x8   :  { %249 = vmatprep.subr.bf16.mxu0 %v618_v9  ;;  %302 = vmatprep.subr.bf16.mxu1 %v620_v10  ;;  %v638_v22 = vld [vmem:[%s978_s1 + $0x4c] ss:$16 sps:$4 sm:$0xff]   ;;  %v640_v23 = vld [vmem:[%s978_s1 + $0x40] ss:$16 sps:$4 sm:$0xff]   ;;  %v641_v24 = vld [vmem:[%s978_s1 + $0x48] ss:$16 sps:$4 sm:$0xff]  }
   0x9   :  { %v642_v25 = vld [vmem:[%s978_s1 + $0x24] ss:$16 sps:$4 sm:$0xff]   ;;  %v644_v26 = vld [vmem:[%s978_s1 + $0x2c] ss:$16 sps:$4 sm:$0xff]   ;;  %v646_v27 = vld [vmem:[%s978_s1 + $0x20] ss:$16 sps:$4 sm:$0xff]  }
   0xa   :  { %v647_v28 = vld [vmem:[%s978_s1 + $0x28] ss:$16 sps:$4 sm:$0xff]   ;;  %v648_v29 = vld [vmem:[%s978_s1 + $0x4] ss:$16 sps:$4 sm:$0xff]   ;;  %v650_v30 = vld [vmem:[%s978_s1 + $0xc] ss:$16 sps:$4 sm:$0xff]  }
   0xb   :  { %250 = vmatpush1.bf16.msra.mxu0 %v622_v11  ;;  %303 = vmatpush1.bf16.msra.mxu1 %v623_v12  ;;  %v652_v31 = vld [vmem:[%s978_s1] ss:$16 sps:$4 sm:$0xff]   ;;  %v653_v32 = vld [vmem:[%s978_s1 + $0x8] ss:$16 sps:$4 sm:$0xff]   ;;  %v54_v36 = vshrl.u32 %v53_v35, 7 }
   0xc   :  { %251 = vmatprep.subr.bf16.mxu0 %v624_v13  ;;  %304 = vmatprep.subr.bf16.mxu1 %v626_v14  ;;  %v654_v33 = vld [vmem:[%s979_s0] sm:$0xff]   ;;  %v655_v34 = vld [vmem:[%s979_s0 + $0x8] sm:$0xff]  }
   0xd   :  { %v55_v37 = vsub.s32 0, %v54_v36  ;;  %v63_v38 = vsub.s32 2, %v54_v36  ;;  %v51_v39 = vld [vmem:[%s980_s2] sm:$0xf]  ;;  %v59_v40 = vsub.s32 1, %v54_v36  ;;  %v67_v41 = vsub.s32 3, %v54_v36 }
   0xf   :  { %252 = vmatpush1.bf16.msra.mxu0 %v628_v15  ;;  %305 = vmatpush1.bf16.msra.mxu1 %v629_v16  ;;  %v818_v42 = vrot.slane %v51_v39, %v55_v37  ;;  %v820_v43 = vrot.slane %v51_v39, %v63_v38  ;;  %v822_v44 = vrot.slane %v51_v39, %v59_v40 }
  0x10   :  { %253 = vmatprep.subr.bf16.mxu0 %v630_v17  ;;  %306 = vmatprep.subr.bf16.mxu1 %v632_v18  ;;  %v824_v45 = vrot.slane %v51_v39, %v67_v41 }
  0x13   :  { %254 = vmatpush1.bf16.msra.mxu0 %v634_v19  ;;  %307 = vmatpush1.bf16.msra.mxu1 %v635_v20 }
  0x14   :  { %255 = vmatprep.subr.bf16.mxu0 %v636_v21  ;;  %308 = vmatprep.subr.bf16.mxu1 %v638_v22 }
  0x17   :  { %256 = vmatpush1.bf16.msra.mxu0 %v640_v23  ;;  %309 = vmatpush1.bf16.msra.mxu1 %v641_v24 }
  0x18   :  { %257 = vmatprep.subr.bf16.mxu0 %v642_v25  ;;  %310 = vmatprep.subr.bf16.mxu1 %v644_v26 }
  0x1b   :  { %258 = vmatpush1.bf16.msra.mxu0 %v646_v27  ;;  %311 = vmatpush1.bf16.msra.mxu1 %v647_v28 }
  0x1c   :  { %259 = vmatprep.subr.bf16.mxu0 %v648_v29  ;;  %312 = vmatprep.subr.bf16.mxu1 %v650_v30 }
  0x1f   :  { %260 = vmatpush1.bf16.msra.mxu0 %v652_v31  ;;  %313 = vmatpush1.bf16.msra.mxu1 %v653_v32 }
  0x22   :  { %278 = vmatmul.mubr.bf16.vlgmr.msra.gmra.mxu0 %v654_v33  ;;  %331 = vmatmul.mubr.bf16.vlgmr.msra.gmra.mxu1 %v654_v33 }
  0x23   :  { %287 = vmatprep.mubr.bf16.mxu0 %v688_v1  ;;  %340 = vmatprep.mubr.bf16.mxu1 %v688_v1 }
  0x2a   :  { %288 = vmatmul.mubr.bf16.gmra.mxu0 %v655_v34  ;;  %341 = vmatmul.mubr.bf16.gmra.mxu1 %v655_v34 }
  0xe2   :  { %v279_v46 = vpop.f32.mrf.mxu0  ;;  %v332_v47 = vpop.f32.mrf.mxu1 }
  0xe3   :  { %v827_v48 = vadd.f32 %v279_v46, %v818_v42  ;;  %v830_v49 = vadd.f32 %v332_v47, %v820_v43 }
  0xe4   :  { %v281_v50 = vpop.f32.mrf.mxu0  ;;  %v334_v51 = vpop.f32.mrf.mxu1 }
  0xe5   :  { %v351_v52 = vmul.f32 %v827_v48, %v827_v48  ;;  %v353_v53 = vmul.f32 %v830_v49, %v830_v49  ;;  %v837_v54 = vadd.f32 %v281_v50, %v822_v44  ;;  %v840_v55 = vadd.f32 %v334_v51, %v824_v45 }
  0xe6   :  { %v283_v56 = vpop.f32.mrf.mxu0  ;;  %v336_v57 = vpop.f32.mrf.mxu1 }
  0xe7   :  { %v367_v58 = vmul.f32 %v351_v52, %v827_v48  ;;  %v369_v59 = vmul.f32 %v353_v53, %v830_v49  ;;  %v352_v60 = vmul.f32 %v837_v54, %v837_v54  ;;  %v354_v61 = vmul.f32 %v840_v55, %v840_v55 }
  0xe8   :  { %v849_v62 = vadd.f32 %v283_v56, %v818_v42  ;;  %v852_v63 = vadd.f32 %v336_v57, %v820_v43  ;;  %v285_v0 = vpop.f32.mrf.mxu0  ;;  %v338_v1 = vpop.f32.mrf.mxu1 }
  0xe9   :  { %v383_v2 = vmul.f32 0.044715, %v367_v58  ;;  %v385_v3 = vmul.f32 0.044715, %v369_v59  ;;  %v368_v4 = vmul.f32 %v352_v60, %v837_v54  ;;  %v370_v5 = vmul.f32 %v354_v61, %v840_v55 }
  0xea   :  { %v355_v6 = vmul.f32 %v849_v62, %v849_v62  ;;  %v357_v7 = vmul.f32 %v852_v63, %v852_v63  ;;  %v861_v8 = vadd.f32 %v285_v0, %v822_v44  ;;  %v864_v9 = vadd.f32 %v338_v1, %v824_v45  ;;  %v289_v10 = vpop.f32.mrf.mxu0  ;;  %v342_v11 = vpop.f32.mrf.mxu1 }
  0xeb   :  { %v399_v12 = vadd.f32 %v383_v2, %v827_v48  ;;  %v401_v13 = vadd.f32 %v385_v3, %v830_v49  ;;  %v384_v14 = vmul.f32 0.044715, %v368_v4  ;;  %v386_v15 = vmul.f32 0.044715, %v370_v5 }
  0xec   :  { %v371_v16 = vmul.f32 %v355_v6, %v849_v62  ;;  %v373_v17 = vmul.f32 %v357_v7, %v852_v63  ;;  %v356_v18 = vmul.f32 %v861_v8, %v861_v8  ;;  %v358_v19 = vmul.f32 %v864_v9, %v864_v9  ;;  %v291_v24 = vpop.f32.mrf.mxu0  ;;  %v344_v29 = vpop.f32.mrf.mxu1 }
  0xed   :  { %v415_v20 = vmul.f32 0.7978846, %v399_v12  ;;  %v417_v21 = vmul.f32 0.7978846, %v401_v13  ;;  %v400_v22 = vadd.f32 %v384_v14, %v837_v54  ;;  %v402_v23 = vadd.f32 %v386_v15, %v840_v55 }
  0xee   :  { %v387_v25 = vmul.f32 0.044715, %v371_v16  ;;  %v389_v26 = vmul.f32 0.044715, %v373_v17  ;;  %v372_v27 = vmul.f32 %v356_v18, %v861_v8  ;;  %v374_v28 = vmul.f32 %v358_v19, %v864_v9  ;;  %v293_v39 = vpop.f32.mrf.mxu0  ;;  %v346_v47 = vpop.f32.mrf.mxu1 }
  0xef   :  { %656 = vtanh.f32 %v415_v20  ;;  %v416_v30 = vmul.f32 0.7978846, %v400_v22  ;;  %v418_v31 = vmul.f32 0.7978846, %v402_v23  ;;  %v879_v32 = vadd.f32 %v289_v10, %v818_v42 }
  0xf0   :  { %658 = vtanh.f32 %v417_v21  ;;  %v403_v33 = vadd.f32 %v387_v25, %v849_v62  ;;  %v405_v34 = vadd.f32 %v389_v26, %v852_v63  ;;  %v388_v35 = vmul.f32 0.044715, %v372_v27  ;;  %v295_v0 = vpop.f32.mrf.mxu0  ;;  %v348_v4 = vpop.f32.mrf.mxu1 }
  0xf1   :  { %660 = vtanh.f32 %v416_v30  ;;  %v390_v36 = vmul.f32 0.044715, %v374_v28  ;;  %v359_v37 = vmul.f32 %v879_v32, %v879_v32  ;;  %v886_v38 = vadd.f32 %v342_v11, %v820_v43 }
  0xf2   :  { %662 = vtanh.f32 %v418_v31  ;;  %v419_v40 = vmul.f32 0.7978846, %v403_v33  ;;  %v421_v41 = vmul.f32 0.7978846, %v405_v34  ;;  %v404_v46 = vadd.f32 %v388_v35, %v861_v8 }
  0xf3   :  { %v406_v50 = vadd.f32 %v390_v36, %v864_v9  ;;  %v375_v51 = vmul.f32 %v359_v37, %v879_v32  ;;  %v361_v52 = vmul.f32 %v886_v38, %v886_v38  ;;  %v894_v53 = vadd.f32 %v291_v24, %v822_v44 }
  0xf4   :  { %664 = vtanh.f32 %v419_v40  ;;  %v420_v56 = vmul.f32 0.7978846, %v404_v46  ;;  %v897_v57 = vadd.f32 %v344_v29, %v824_v45  ;;  %v900_v58 = vadd.f32 %v293_v39, %v818_v42 }
  0xf5   :  { %666 = vtanh.f32 %v421_v41  ;;  %v422_v59 = vmul.f32 0.7978846, %v406_v50  ;;  %v391_v60 = vmul.f32 0.044715, %v375_v51  ;;  %v377_v61 = vmul.f32 %v361_v52, %v886_v38 }
  0xf6   :  { %668 = vtanh.f32 %v420_v56  ;;  %v360_v1 = vmul.f32 %v894_v53, %v894_v53  ;;  %v362_v2 = vmul.f32 %v897_v57, %v897_v57  ;;  %v363_v3 = vmul.f32 %v900_v58, %v900_v58 }
  0xf7   :  { %670 = vtanh.f32 %v422_v59  ;;  %v407_v42 = vadd.f32 %v391_v60, %v879_v32  ;;  %v393_v5 = vmul.f32 0.044715, %v377_v61  ;;  %v911_v6 = vadd.f32 %v346_v47, %v820_v43 }
  0xf8   :  { %v376_v7 = vmul.f32 %v360_v1, %v894_v53  ;;  %v378_v10 = vmul.f32 %v362_v2, %v897_v57  ;;  %v379_v11 = vmul.f32 %v363_v3, %v900_v58  ;;  %v917_v12 = vadd.f32 %v295_v0, %v822_v44 }
  0xf9   :  { %v423_v13 = vmul.f32 0.7978846, %v407_v42  ;;  %v409_v14 = vadd.f32 %v393_v5, %v886_v38  ;;  %v365_v15 = vmul.f32 %v911_v6, %v911_v6  ;;  %v923_v16 = vadd.f32 %v348_v4, %v824_v45 }
  0xfa   :  { %v392_v43 = vmul.f32 0.044715, %v376_v7  ;;  %v394_v17 = vmul.f32 0.044715, %v378_v10  ;;  %v395_v18 = vmul.f32 0.044715, %v379_v11  ;;  %v364_v19 = vmul.f32 %v917_v12, %v917_v12 }
  0xfb   :  { %672 = vtanh.f32 %v423_v13  ;;  %v425_v20 = vmul.f32 0.7978846, %v409_v14  ;;  %v381_v44 = vmul.f32 %v365_v15, %v911_v6  ;;  %v366_v21 = vmul.f32 %v923_v16, %v923_v16 }
  0xfc   :  { %v657_v22 = vpop.eup %656  ;;  %v408_v23 = vadd.f32 %v392_v43, %v894_v53  ;;  %v410_v24 = vadd.f32 %v394_v17, %v897_v57  ;;  %v411_v45 = vadd.f32 %v395_v18, %v900_v58  ;;  %v380_v25 = vmul.f32 %v364_v19, %v917_v12 }
  0xfd   :  { %v659_v26 = vpop.eup %658  ;;  %v447_v27 = vadd.f32 1.0, %v657_v22  ;;  %674 = vtanh.f32 %v425_v20  ;;  %v397_v28 = vmul.f32 0.044715, %v381_v44  ;;  %v382_v34 = vmul.f32 %v366_v21, %v923_v16 }
  0xfe   :  { %v661_v29 = vpop.eup %660  ;;  %v449_v30 = vadd.f32 1.0, %v659_v26  ;;  %v424_v31 = vmul.f32 0.7978846, %v408_v23  ;;  %v426_v33 = vmul.f32 0.7978846, %v410_v24 }
  0xff   :  { %v663_v35 = vpop.eup %662  ;;  %v463_v36 = vmul.f32 0.5, %v447_v27  ;;  %v448_v37 = vadd.f32 1.0, %v661_v29  ;;  %v427_v39 = vmul.f32 0.7978846, %v411_v45  ;;  %v413_v40 = vadd.f32 %v397_v28, %v911_v6 }
 0x100   :  { %v465_v41 = vmul.f32 0.5, %v449_v30  ;;  %v450_v46 = vadd.f32 1.0, %v663_v35  ;;  %676 = vtanh.f32 %v424_v31  ;;  %v396_v47 = vmul.f32 0.044715, %v380_v25 }
 0x101   :  { %v665_v50 = vpop.eup %664  ;;  %v479_v51 = vmul.f32 %v463_v36, %v827_v48  ;;  %v464_v52 = vmul.f32 0.5, %v448_v37  ;;  %678 = vtanh.f32 %v426_v33  ;;  %v429_v56 = vmul.f32 0.7978846, %v413_v40 }
 0x102   :  { %v667_v59 = vpop.eup %666  ;;  %v481_v60 = vmul.f32 %v465_v41, %v830_v49  ;;  %v466_v61 = vmul.f32 0.5, %v450_v46  ;;  %v451_v0 = vadd.f32 1.0, %v665_v50  ;;  %680 = vtanh.f32 %v427_v39 }
 0x103   :  { %v669_v1 = vpop.eup %668  ;;  %v480_v2 = vmul.f32 %v464_v52, %v837_v54  ;;  %v453_v3 = vadd.f32 1.0, %v667_v59  ;;  %682 = vtanh.f32 %v429_v56  ;;  %v412_v4 = vadd.f32 %v396_v47, %v917_v12 }
 0x104   :  { %v671_v42 = vpop.eup %670  ;;  %v482_v5 = vmul.f32 %v466_v61, %v840_v55  ;;  %v467_v48 = vmul.f32 0.5, %v451_v0  ;;  %v452_v7 = vadd.f32 1.0, %v669_v1  ;;  %v398_v10 = vmul.f32 0.044715, %v382_v34 }
 0x105   :  { %v597_v11 = vpack.c.bf16 %v480_v2, %v479_v51  ;;  %v469_v13 = vmul.f32 0.5, %v453_v3  ;;  %v454_v14 = vadd.f32 1.0, %v671_v42  ;;  %v428_v49 = vmul.f32 0.7978846, %v412_v4 }
 0x106   :  { %v598_v15 = vpack.c.bf16 %v482_v5, %v481_v60  ;;  %v468_v43 = vmul.f32 0.5, %v452_v7  ;;  %v414_v17 = vadd.f32 %v398_v10, %v923_v16  ;;  %v483_v55 = vmul.f32 %v467_v48, %v849_v62 }
 0x107   :  { %543 = vst [vmem:[%s981_s3] sm:$0xff] %v597_v11  ;;  %v470_v54 = vmul.f32 0.5, %v454_v14  ;;  %684 = vtanh.f32 %v428_v49  ;;  %v485_v44 = vmul.f32 %v469_v13, %v852_v63 }
 0x108   :  { %v673_v18 = vpop.eup %672  ;;  %544 = vst [vmem:[%s981_s3 + $0x8] sm:$0xff] %v598_v15  ;;  %v484_v19 = vmul.f32 %v468_v43, %v861_v8  ;;  %v430_v20 = vmul.f32 0.7978846, %v414_v17 }
 0x109   :  { %v486_v21 = vmul.f32 %v470_v54, %v864_v9  ;;  %v455_v24 = vadd.f32 1.0, %v673_v18 }
 0x10a   :  { %v675_v22 = vpop.eup %674  ;;  %v599_v23 = vpack.c.bf16 %v484_v19, %v483_v55  ;;  %686 = vtanh.f32 %v430_v20 }
 0x10b   :  { %v600_v45 = vpack.c.bf16 %v486_v21, %v485_v44  ;;  %v457_v25 = vadd.f32 1.0, %v675_v22  ;;  %v471_v8 = vmul.f32 0.5, %v455_v24 }
 0x10c   :  { %545 = vst [vmem:[%s981_s3 + $0x10] sm:$0xff] %v599_v23 }
 0x10d   :  { %v677_v26 = vpop.eup %676  ;;  %546 = vst [vmem:[%s981_s3 + $0x18] sm:$0xff] %v600_v45  ;;  %v473_v9 = vmul.f32 0.5, %v457_v25  ;;  %v487_v34 = vmul.f32 %v471_v8, %v879_v32 }
 0x10e   :  { %v679_v62 = vpop.eup %678  ;;  %v456_v63 = vadd.f32 1.0, %v677_v26 }
 0x10f   :  { %v681_v27 = vpop.eup %680  ;;  %v458_v28 = vadd.f32 1.0, %v679_v62  ;;  %v489_v36 = vmul.f32 %v473_v9, %v886_v38 }
 0x110   :  { %v683_v29 = vpop.eup %682  ;;  %v472_v30 = vmul.f32 0.5, %v456_v63  ;;  %v459_v33 = vadd.f32 1.0, %v681_v27 }
 0x111   :  { %v474_v31 = vmul.f32 0.5, %v458_v28  ;;  %v461_v41 = vadd.f32 1.0, %v683_v29 }
 0x112   :  { %v488_v35 = vmul.f32 %v472_v30, %v894_v53  ;;  %v475_v47 = vmul.f32 0.5, %v459_v33 }
 0x113   :  { %v490_v37 = vmul.f32 %v474_v31, %v897_v57  ;;  %v477_v53 = vmul.f32 0.5, %v461_v41 }
 0x114   :  { %v685_v39 = vpop.eup %684  ;;  %v601_v40 = vpack.c.bf16 %v488_v35, %v487_v34  ;;  %v491_v57 = vmul.f32 %v475_v47, %v900_v58 }
 0x115   :  { %v602_v46 = vpack.c.bf16 %v490_v37, %v489_v36  ;;  %v460_v50 = vadd.f32 1.0, %v685_v39  ;;  %v493_v60 = vmul.f32 %v477_v53, %v911_v6 }
 0x116   :  { %547 = vst [vmem:[%s981_s3 + $0x20] sm:$0xff] %v601_v40 }
 0x117   :  { %v687_v51 = vpop.eup %686  ;;  %548 = vst [vmem:[%s981_s3 + $0x28] sm:$0xff] %v602_v46  ;;  %v476_v32 = vmul.f32 0.5, %v460_v50 }
 0x118   :  { %v462_v38 = vadd.f32 1.0, %v687_v51 }
 0x119   :  { %v492_v52 = vmul.f32 %v476_v32, %v917_v12 }
 0x11a   :  { %v478_v56 = vmul.f32 0.5, %v462_v38 }
 0x11b   :  { %v603_v59 = vpack.c.bf16 %v492_v52, %v491_v57 }
 0x11c   :  { %v494_v61 = vmul.f32 %v478_v56, %v923_v16 }
 0x11d   :  { %549 = vst [vmem:[%s981_s3 + $0x30] sm:$0xff] %v603_v59 }
 0x11e   :  { %v604_v0 = vpack.c.bf16 %v494_v61, %v493_v60 }
 0x120   :  { %550 = vst [vmem:[%s981_s3 + $0x38] sm:$0xff] %v604_v0 }

</bundles_post_ra>
